<compile_context>
chip_gen: v6e
topology: v6e:2x2x1
jax: 0.10.0
libtpu: 0.0.40
codegen_flags: <defaults>
</compile_context>

<pallas_src>
import functools

import jax
import jax.numpy as jnp
from jax import lax
from jax.experimental import pallas as pl
from jax.experimental.pallas import tpu as pltpu

_LANE = 128  # TPU lane width; channels are padded to a multiple of this.


def _round_up(n, m):
  return ((n + m - 1) // m) * m


def _pad_to(a, shape):
  return jnp.pad(a, [(0, t - s) for s, t in zip(a.shape, shape)])


def _unit_channels(in_ch, out_ch, exit_flow):
  if exit_flow:
    return [(in_ch, in_ch), (in_ch, out_ch), (out_ch, out_ch)]
  return [(in_ch, out_ch), (out_ch, out_ch), (out_ch, out_ch)]


# ---------------------------------------------------------------------------
# Fused separable-unit kernel:
#   [pre-ReLU] -> DW3x3 (+folded BN scale) +BN shift -> PW1x1 (MXU) -> BN
#   [-> + skip (1x1 conv + BN, or identity)]
# One grid step processes one batch image: (1, H, W, Cin) -> (1, Ho, Wo, Cout).
# ---------------------------------------------------------------------------
def _fused_unit_kernel(*refs, H, W, Ho, Wo, dil, stride, pad, w_off,
                       pre_relu, skip_mode):
  if skip_mode == "conv":
    (x_ref, dww_ref, dwsh_ref, pww_ref, psc_ref, psh_ref,
     x0_ref, sw_ref, ssc_ref, ssh_ref, o_ref, xpad_ref) = refs
  elif skip_mode == "identity":
    (x_ref, dww_ref, dwsh_ref, pww_ref, psc_ref, psh_ref,
     x0_ref, o_ref, xpad_ref) = refs
  else:
    (x_ref, dww_ref, dwsh_ref, pww_ref, psc_ref, psh_ref,
     o_ref, xpad_ref) = refs

  cin = x_ref.shape[-1]
  cout = o_ref.shape[-1]

  # 1) pre-ReLU, then in-kernel zero padding (halo) via an f32 VMEM scratch.
  #    The image is placed at a sublane-aligned W offset (w_off) so the
  #    interior store is an aligned store; only the tap reads are unaligned.
  x = x_ref[0].astype(jnp.float32)
  if pre_relu:
    x = jnp.maximum(x, 0.0)
  xpad_ref[...] = jnp.zeros(xpad_ref.shape, jnp.float32)
  xpad_ref[pl.ds(pad, H), pl.ds(w_off, W), :] = x

  # 2) depthwise 3x3 (BN scale pre-folded into the taps), f32 accumulation.
  #    NOTE(vreg pressure): at much larger tiles, restructure the 3x3 unroll as
  #    a fori_loop(unroll=True) over ky to bound the live tap set.
  acc = jnp.zeros((Ho, Wo, cin), jnp.float32)
  if stride == 1:
    xp = xpad_ref[...]
  for ky in range(3):
    for kx in range(3):
      h0 = ky * dil
      w0 = w_off - pad + kx * dil
      if stride == 1:
        tap = xp[h0:h0 + Ho, w0:w0 + Wo, :]
      else:
        # stride handled in-kernel: read only the needed output positions.
        tap = xpad_ref[pl.ds(h0, Ho, stride), pl.ds(w0, Wo, stride), :]
      acc = acc + tap * dww_ref[ky * 3 + kx, :].astype(jnp.float32)
  dw = acc + dwsh_ref[0, :]                  # depthwise-BN shift (scale folded)

  # 3) pointwise 1x1 conv as an MXU matmul over the (Ho*Wo, Cin) tile + BN.
  dw2d = dw.reshape(Ho * Wo, cin).astype(pww_ref.dtype)
  y = jnp.dot(dw2d, pww_ref[...], preferred_element_type=jnp.float32)
  y = y * psc_ref[0, :] + psh_ref[0, :]

  # 4) fused residual path (no separate skip pallas_call / HBM tensor).
  if skip_mode == "conv":
    if stride == 1:
      xs = x0_ref[0]
    else:
      xs = x0_ref[0, pl.ds(0, Ho, stride), pl.ds(0, Wo, stride), :]
    xs2d = xs.reshape(Ho * Wo, xs.shape[-1]).astype(sw_ref.dtype)
    sk = jnp.dot(xs2d, sw_ref[...], preferred_element_type=jnp.float32)
    y = y + sk * ssc_ref[0, :] + ssh_ref[0, :]
  elif skip_mode == "identity":
    y = y + x0_ref[0].reshape(Ho * Wo, cout).astype(jnp.float32)

  o_ref[0] = y.reshape(Ho, Wo, cout).astype(o_ref.dtype)


def _fused_sep_unit(x, unit, *, dil, stride, pre_relu, skip_mode, skip_args):
  """Runs one fused separable unit over a (B, H, W, Cpadded) NHWC activation."""
  B, H, W, cin = x.shape
  assert stride >= 1 and dil >= 1
  pad = dil if dil > 1 else 1                 # kernel_size == 3  =>  pad == dil
  Ho = (H + 2 * pad - (2 * dil + 1)) // stride + 1
  Wo = (W + 2 * pad - (2 * dil + 1)) // stride + 1
  cout = unit["pw_w"].shape[1]
  w_off = _round_up(pad, 8)                   # sublane-aligned interior offset

  def act_spec(shape):
    return pl.BlockSpec((1,) + tuple(shape[1:]), lambda b: (b, 0, 0, 0))

  def rep_spec(shape):
    assert len(shape) == 2
    return pl.BlockSpec(tuple(shape), lambda b: (0, 0))

  in_specs = [act_spec(x.shape),
              rep_spec(unit["dw_w"].shape),
              rep_spec(unit["dw_shift"].shape),
              rep_spec(unit["pw_w"].shape),
              rep_spec(unit["post_scale"].shape),
              rep_spec(unit["post_shift"].shape)]
  args = [x, unit["dw_w"], unit["dw_shift"], unit["pw_w"],
          unit["post_scale"], unit["post_shift"]]
  if skip_mode == "conv":
    x0, sw, ssc, ssh = skip_args
    in_specs += [act_spec(x0.shape), rep_spec(sw.shape),
                 rep_spec(ssc.shape), rep_spec(ssh.shape)]
    args += [x0, sw, ssc, ssh]
  elif skip_mode == "identity":
    (x0,) = skip_args
    in_specs += [act_spec(x0.shape)]
    args += [x0]

  kern = functools.partial(
      _fused_unit_kernel, H=H, W=W, Ho=Ho, Wo=Wo, dil=dil, stride=stride,
      pad=pad, w_off=w_off, pre_relu=pre_relu, skip_mode=skip_mode)

  return pl.pallas_call(
      kern,
      grid=(B,),
      out_shape=jax.ShapeDtypeStruct((B, Ho, Wo, cout), x.dtype),
      in_specs=in_specs,
      out_specs=pl.BlockSpec((1, Ho, Wo, cout), lambda b: (b, 0, 0, 0)),
      scratch_shapes=[
          pltpu.VMEM((H + 2 * pad, w_off + W + pad, cin), jnp.float32)],
      compiler_params=pltpu.CompilerParams(
          dimension_semantics=("parallel",),
          vmem_limit_bytes=64 * 1024 * 1024),
  )(*args)


# ---------------------------------------------------------------------------
# Parameter construction (deterministic, synthetic) and preparation
# ---------------------------------------------------------------------------
def _bn_affine(gamma, beta, mean, var, eps=1e-5):
  scale = gamma / jnp.sqrt(var + eps)
  shift = beta - mean * scale
  return (scale.reshape(1, -1).astype(jnp.float32),
          shift.reshape(1, -1).astype(jnp.float32))


def _make_bn(key, c):
  k1, k2, k3, k4 = jax.random.split(key, 4)
  gamma = 1.0 + 0.1 * jax.random.normal(k1, (c,), jnp.float32)
  beta = 0.1 * jax.random.normal(k2, (c,), jnp.float32)
  mean = 0.1 * jax.random.normal(k3, (c,), jnp.float32)
  var = jax.random.uniform(k4, (c,), jnp.float32, 0.5, 1.5)
  return _bn_affine(gamma, beta, mean, var)


def make_params(key, in_ch, out_ch, stride=1, exit_flow=False):
  """Raw (un-padded, f32) parameters matching the PyTorch module layout."""
  chans = _unit_channels(in_ch, out_ch, exit_flow)
  params = {}
  keys = jax.random.split(key, 16)
  ki = 0
  for i, (cin, cout) in enumerate(chans):
    dw_w9 = 0.2 * jax.random.normal(keys[ki], (9, cin), jnp.float32); ki += 1
    dw_scale, dw_shift = _make_bn(keys[ki], cin); ki += 1
    pw_w = 0.2 * jax.random.normal(keys[ki], (cin, cout), jnp.float32); ki += 1
    post_scale, post_shift = _make_bn(keys[ki], cout); ki += 1
    params[f"ds{i}"] = dict(dw_w9=dw_w9, dw_scale=dw_scale, dw_shift=dw_shift,
                            pw_w=pw_w, post_scale=post_scale,
                            post_shift=post_shift)
  if in_ch != out_ch or stride != 1:
    w = 0.2 * jax.random.normal(keys[ki], (in_ch, out_ch), jnp.float32); ki += 1
    scale, shift = _make_bn(keys[ki], out_ch); ki += 1
    params["skip"] = dict(w=w, scale=scale, shift=shift)
  return params


def prepare_params(params, *, in_ch, out_ch, exit_flow, dtype):
  """Fold DW BN scale into taps, zero-pad channels to multiples of 128, cast."""
  chans = _unit_channels(in_ch, out_ch, exit_flow)
  prep = {}
  for i, (cin, cout) in enumerate(chans):
    cin_p, cout_p = _round_up(cin, _LANE), _round_up(cout, _LANE)
    p = params[f"ds{i}"]
    dw_w = p["dw_w9"] * p["dw_scale"]               # fold BN scale into taps
    prep[f"ds{i}"] = dict(
        dw_w=_pad_to(dw_w, (9, cin_p)).astype(dtype),
        dw_shift=_pad_to(p["dw_shift"], (1, cin_p)).astype(jnp.float32),
        pw_w=_pad_to(p["pw_w"], (cin_p, cout_p)).astype(dtype),
        post_scale=_pad_to(p["post_scale"], (1, cout_p)).astype(jnp.float32),
        post_shift=_pad_to(p["post_shift"], (1, cout_p)).astype(jnp.float32),
    )
  if "skip" in params:
    sp = params["skip"]
    cin_p, cout_p = _round_up(in_ch, _LANE), _round_up(out_ch, _LANE)
    prep["skip"] = dict(
        w=_pad_to(sp["w"], (cin_p, cout_p)).astype(dtype),
        scale=_pad_to(sp["scale"], (1, cout_p)).astype(jnp.float32),
        shift=_pad_to(sp["shift"], (1, cout_p)).astype(jnp.float32),
    )
  return prep


# ---------------------------------------------------------------------------
# XceptionBlock forward (3 fused Pallas kernels + thin JAX glue)
# ---------------------------------------------------------------------------
def xception_block_forward(x_nchw, params, *, in_ch, out_ch, stride=1,
                           dilation=1, exit_flow=False, use_1st_relu=True,
                           compute_dtype=jnp.bfloat16):
  B, C, H, W = x_nchw.shape
  assert C == in_ch
  prep = prepare_params(params, in_ch=in_ch, out_ch=out_ch,
                        exit_flow=exit_flow, dtype=compute_dtype)

  # NCHW -> NHWC (channels on the 128-lane axis), pad channels to a lane-dense
  # multiple of 128; activations stored in compute_dtype (bf16 halves HBM
  # traffic on v6e/v7x), accumulation stays f32 inside the kernels.
  cin_p = _round_up(in_ch, _LANE)
  x = jnp.transpose(x_nchw, (0, 2, 3, 1))
  x = _pad_to(x, (B, H, W, cin_p)).astype(compute_dtype)
  x0 = x

  strides = (1, 1, stride)
  relus = (use_1st_relu, True, True)
  h = x
  for i in range(3):
    skip_mode, skip_args = None, ()
    if i == 2:
      if "skip" in params:
        sp = prep["skip"]
        skip_mode = "conv"
        skip_args = (x0, sp["w"], sp["scale"], sp["shift"])
      else:
        skip_mode, skip_args = "identity", (x0,)
    h = _fused_sep_unit(h, prep[f"ds{i}"], dil=dilation, stride=strides[i],
                        pre_relu=relus[i], skip_mode=skip_mode,
                        skip_args=skip_args)

  out = h[..., :out_ch].astype(jnp.float32)
  return jnp.transpose(out, (0, 3, 1, 2))      # back to NCHW


# ---------------------------------------------------------------------------
# Pure-JAX reference (lax convs) for validation
# ---------------------------------------------------------------------------
def _ref_forward(x_nchw, params, *, in_ch, out_ch, stride=1, dilation=1,
                 exit_flow=False, use_1st_relu=True):
  dn = ("NHWC", "HWIO", "NHWC")
  x = jnp.transpose(x_nchw, (0, 2, 3, 1)).astype(jnp.float32)
  chans = _unit_channels(in_ch, out_ch, exit_flow)
  conv_strides = [1, 1, stride]
  pre_relu = [use_1st_relu, True, True]
  pad = dilation if dilation > (3 // 2) else 3 // 2

  h = x
  for i, (cin, cout) in enumerate(chans):
    p = params[f"ds{i}"]
    if pre_relu[i]:
      h = jnp.maximum(h, 0.0)
    dw_rhs = p["dw_w9"].reshape(3, 3, cin)[:, :, None, :]  # (3,3,1,C)
    h = lax.conv_general_dilated(
        h, dw_rhs, window_strides=(conv_strides[i], conv_strides[i]),
        padding=[(pad, pad), (pad, pad)], rhs_dilation=(dilation, dilation),
        dimension_numbers=dn, feature_group_count=cin)
    h = h * p["dw_scale"][0] + p["dw_shift"][0]
    h = lax.conv_general_dilated(h, p["pw_w"][None, None], (1, 1), "VALID",
                                 dimension_numbers=dn)
    h = h * p["post_scale"][0] + p["post_shift"][0]
  if "skip" in params:
    sp = params["skip"]
    skip = lax.conv_general_dilated(x, sp["w"][None, None], (stride, stride),
                                    "VALID", dimension_numbers=dn)
    skip = skip * sp["scale"][0] + sp["shift"][0]
  else:
    skip = x
  return jnp.transpose(h + skip, (0, 3, 1, 2))


# ---------------------------------------------------------------------------
if __name__ == "__main__":
  B, H, W = 2, 16, 16
  key = jax.random.PRNGKey(0)

  configs = [
      dict(in_ch=4, out_ch=8, stride=1, dilation=1),   # 1x1-conv skip path
      dict(in_ch=8, out_ch=8, stride=1, dilation=1),   # identity-skip path
      dict(in_ch=4, out_ch=8, stride=1, dilation=2),   # dilated DW conv
  ]

  for cfg in configs:
    key, kx, kp = jax.random.split(key, 3)
    x = jax.random.normal(kx, (B, cfg["in_ch"], H, W), jnp.float32)
    params = make_params(kp, cfg["in_ch"], cfg["out_ch"], stride=cfg["stride"])
    ref = _ref_forward(x, params, **cfg)

    # f32 path: tight check.
    out = xception_block_forward(x, params, **cfg, compute_dtype=jnp.float32)
    out = jax.block_until_ready(out)
    assert out.shape == ref.shape, (out.shape, ref.shape)
    assert jnp.allclose(out, ref, atol=5e-3, rtol=5e-3), (
        cfg, float(jnp.max(jnp.abs(out - ref))))

    # bf16 storage / MXU-input path (v6e/v7x recommendation): loose check,
    # accumulation stays f32.
    out_bf = xception_block_forward(x, params, **cfg,
                                    compute_dtype=jnp.bfloat16)
    out_bf = jax.block_until_ready(out_bf)
    assert jnp.allclose(out_bf, ref, atol=1e-1, rtol=5e-2), (
        cfg, float(jnp.max(jnp.abs(out_bf - ref))))

  print("KERNEL_OK")
</pallas_src>

<mosaic_0001>
module attributes {stable_mosaic.version = 11 : i64} {
  func.func @_fused_unit_kernel(%arg0: i32, %arg1: memref<1x16x16x128xf32, #tpu.memory_space<vmem>>, %arg2: memref<9x128xf32, #tpu.memory_space<vmem>>, %arg3: memref<1x128xf32, #tpu.memory_space<vmem>>, %arg4: memref<128x128xf32, #tpu.memory_space<vmem>>, %arg5: memref<1x128xf32, #tpu.memory_space<vmem>>, %arg6: memref<1x128xf32, #tpu.memory_space<vmem>>, %arg7: memref<1x16x16x128xf32, #tpu.memory_space<vmem>>, %arg8: memref<18x25x128xf32, #tpu.memory_space<vmem>>) attributes {dimension_semantics = [#tpu.dimension_semantics<parallel>], iteration_bounds = array<i64: 2>, scalar_prefetch = 0 : i64, scratch_operands = 1 : i64, tpu.core_type = #tpu.core_type<tc>, window_params = [{transform_indices = @transform_0, window_bounds = array<i64: 1, 16, 16, 128>}, {pipeline_mode = #tpu.pipeline_mode<synchronous>, transform_indices = @transform_1, window_bounds = array<i64: 9, 128>}, {pipeline_mode = #tpu.pipeline_mode<synchronous>, transform_indices = @transform_2, window_bounds = array<i64: 1, 128>}, {pipeline_mode = #tpu.pipeline_mode<synchronous>, transform_indices = @transform_3, window_bounds = array<i64: 128, 128>}, {pipeline_mode = #tpu.pipeline_mode<synchronous>, transform_indices = @transform_4, window_bounds = array<i64: 1, 128>}, {pipeline_mode = #tpu.pipeline_mode<synchronous>, transform_indices = @transform_5, window_bounds = array<i64: 1, 128>}, {transform_indices = @transform_6, window_bounds = array<i64: 1, 16, 16, 128>}]} {
    %c0 = arith.constant 0 : index
    %c0_0 = arith.constant 0 : index
    %c0_1 = arith.constant 0 : index
    %c0_2 = arith.constant 0 : index
    %0 = vector.load %arg1[%c0, %c0_0, %c0_1, %c0_2] : memref<1x16x16x128xf32, #tpu.memory_space<vmem>>, vector<1x16x16x128xf32>
    %1 = vector.shape_cast %0 : vector<1x16x16x128xf32> to vector<16x16x128xf32>
    %cst = arith.constant 0.000000e+00 : f32
    %2 = vector.broadcast %cst : f32 to vector<16x16x128xf32>
    %3 = arith.maximumf %1, %2 : vector<16x16x128xf32>
    %cst_3 = arith.constant 0.000000e+00 : f32
    %4 = vector.broadcast %cst_3 : f32 to vector<18x25x128xf32>
    %c0_4 = arith.constant 0 : index
    %c0_5 = arith.constant 0 : index
    %c0_6 = arith.constant 0 : index
    %5 = vector.load %arg8[%c0_4, %c0_5, %c0_6] : memref<18x25x128xf32, #tpu.memory_space<vmem>>, vector<18x25x128xf32>
    tpu.vector_store %arg8[%c0_4, %c0_5, %c0_6], %4 {strides = array<i32>} : memref<18x25x128xf32, #tpu.memory_space<vmem>>, vector<18x25x128xf32>,
    %c1 = arith.constant 1 : index
    %c8 = arith.constant 8 : index
    %c0_7 = arith.constant 0 : index
    %6 = vector.load %arg8[%c1, %c8, %c0_7] : memref<18x25x128xf32, #tpu.memory_space<vmem>>, vector<16x16x128xf32>
    tpu.vector_store %arg8[%c1, %c8, %c0_7], %3 {strides = array<i32>} : memref<18x25x128xf32, #tpu.memory_space<vmem>>, vector<16x16x128xf32>,
    %cst_8 = arith.constant 0.000000e+00 : f32
    %7 = vector.broadcast %cst_8 : f32 to vector<16x16x128xf32>
    %c0_9 = arith.constant 0 : index
    %c0_10 = arith.constant 0 : index
    %c0_11 = arith.constant 0 : index
    %8 = vector.load %arg8[%c0_9, %c0_10, %c0_11] : memref<18x25x128xf32, #tpu.memory_space<vmem>>, vector<18x25x128xf32>
    %9 = vector.extract_strided_slice %8 {offsets = [0, 7, 0], sizes = [16, 16, 128], strides = [1, 1, 1]} : vector<18x25x128xf32> to vector<16x16x128xf32>
    %c0_12 = arith.constant 0 : index
    %c0_13 = arith.constant 0 : index
    %10 = vector.load %arg2[%c0_12, %c0_13] : memref<9x128xf32, #tpu.memory_space<vmem>>, vector<1x128xf32>
    %11 = vector.shape_cast %10 : vector<1x128xf32> to vector<128xf32>
    %12 = vector.shape_cast %11 : vector<128xf32> to vector<1x1x128xf32>
    %13 = vector.broadcast %12 : vector<1x1x128xf32> to vector<16x16x128xf32>
    %14 = arith.mulf %9, %13 : vector<16x16x128xf32>
    %15 = arith.addf %7, %14 : vector<16x16x128xf32>
    %16 = vector.extract_strided_slice %8 {offsets = [0, 8, 0], sizes = [16, 16, 128], strides = [1, 1, 1]} : vector<18x25x128xf32> to vector<16x16x128xf32>
    %c1_14 = arith.constant 1 : index
    %c0_15 = arith.constant 0 : index
    %17 = vector.load %arg2[%c1_14, %c0_15] : memref<9x128xf32, #tpu.memory_space<vmem>>, vector<1x128xf32>
    %18 = vector.shape_cast %17 : vector<1x128xf32> to vector<128xf32>
    %19 = vector.shape_cast %18 : vector<128xf32> to vector<1x1x128xf32>
    %20 = vector.broadcast %19 : vector<1x1x128xf32> to vector<16x16x128xf32>
    %21 = arith.mulf %16, %20 : vector<16x16x128xf32>
    %22 = arith.addf %15, %21 : vector<16x16x128xf32>
    %23 = vector.extract_strided_slice %8 {offsets = [0, 9, 0], sizes = [16, 16, 128], strides = [1, 1, 1]} : vector<18x25x128xf32> to vector<16x16x128xf32>
    %c2 = arith.constant 2 : index
    %c0_16 = arith.constant 0 : index
    %24 = vector.load %arg2[%c2, %c0_16] : memref<9x128xf32, #tpu.memory_space<vmem>>, vector<1x128xf32>
    %25 = vector.shape_cast %24 : vector<1x128xf32> to vector<128xf32>
    %26 = vector.shape_cast %25 : vector<128xf32> to vector<1x1x128xf32>
    %27 = vector.broadcast %26 : vector<1x1x128xf32> to vector<16x16x128xf32>
    %28 = arith.mulf %23, %27 : vector<16x16x128xf32>
    %29 = arith.addf %22, %28 : vector<16x16x128xf32>
    %30 = vector.extract_strided_slice %8 {offsets = [1, 7, 0], sizes = [16, 16, 128], strides = [1, 1, 1]} : vector<18x25x128xf32> to vector<16x16x128xf32>
    %c3 = arith.constant 3 : index
    %c0_17 = arith.constant 0 : index
    %31 = vector.load %arg2[%c3, %c0_17] : memref<9x128xf32, #tpu.memory_space<vmem>>, vector<1x128xf32>
    %32 = vector.shape_cast %31 : vector<1x128xf32> to vector<128xf32>
    %33 = vector.shape_cast %32 : vector<128xf32> to vector<1x1x128xf32>
    %34 = vector.broadcast %33 : vector<1x1x128xf32> to vector<16x16x128xf32>
    %35 = arith.mulf %30, %34 : vector<16x16x128xf32>
    %36 = arith.addf %29, %35 : vector<16x16x128xf32>
    %37 = vector.extract_strided_slice %8 {offsets = [1, 8, 0], sizes = [16, 16, 128], strides = [1, 1, 1]} : vector<18x25x128xf32> to vector<16x16x128xf32>
    %c4 = arith.constant 4 : index
    %c0_18 = arith.constant 0 : index
    %38 = vector.load %arg2[%c4, %c0_18] : memref<9x128xf32, #tpu.memory_space<vmem>>, vector<1x128xf32>
    %39 = vector.shape_cast %38 : vector<1x128xf32> to vector<128xf32>
    %40 = vector.shape_cast %39 : vector<128xf32> to vector<1x1x128xf32>
    %41 = vector.broadcast %40 : vector<1x1x128xf32> to vector<16x16x128xf32>
    %42 = arith.mulf %37, %41 : vector<16x16x128xf32>
    %43 = arith.addf %36, %42 : vector<16x16x128xf32>
    %44 = vector.extract_strided_slice %8 {offsets = [1, 9, 0], sizes = [16, 16, 128], strides = [1, 1, 1]} : vector<18x25x128xf32> to vector<16x16x128xf32>
    %c5 = arith.constant 5 : index
    %c0_19 = arith.constant 0 : index
    %45 = vector.load %arg2[%c5, %c0_19] : memref<9x128xf32, #tpu.memory_space<vmem>>, vector<1x128xf32>
    %46 = vector.shape_cast %45 : vector<1x128xf32> to vector<128xf32>
    %47 = vector.shape_cast %46 : vector<128xf32> to vector<1x1x128xf32>
    %48 = vector.broadcast %47 : vector<1x1x128xf32> to vector<16x16x128xf32>
    %49 = arith.mulf %44, %48 : vector<16x16x128xf32>
    %50 = arith.addf %43, %49 : vector<16x16x128xf32>
    %51 = vector.extract_strided_slice %8 {offsets = [2, 7, 0], sizes = [16, 16, 128], strides = [1, 1, 1]} : vector<18x25x128xf32> to vector<16x16x128xf32>
    %c6 = arith.constant 6 : index
    %c0_20 = arith.constant 0 : index
    %52 = vector.load %arg2[%c6, %c0_20] : memref<9x128xf32, #tpu.memory_space<vmem>>, vector<1x128xf32>
    %53 = vector.shape_cast %52 : vector<1x128xf32> to vector<128xf32>
    %54 = vector.shape_cast %53 : vector<128xf32> to vector<1x1x128xf32>
    %55 = vector.broadcast %54 : vector<1x1x128xf32> to vector<16x16x128xf32>
    %56 = arith.mulf %51, %55 : vector<16x16x128xf32>
    %57 = arith.addf %50, %56 : vector<16x16x128xf32>
    %58 = vector.extract_strided_slice %8 {offsets = [2, 8, 0], sizes = [16, 16, 128], strides = [1, 1, 1]} : vector<18x25x128xf32> to vector<16x16x128xf32>
    %c7 = arith.constant 7 : index
    %c0_21 = arith.constant 0 : index
    %59 = vector.load %arg2[%c7, %c0_21] : memref<9x128xf32, #tpu.memory_space<vmem>>, vector<1x128xf32>
    %60 = vector.shape_cast %59 : vector<1x128xf32> to vector<128xf32>
    %61 = vector.shape_cast %60 : vector<128xf32> to vector<1x1x128xf32>
    %62 = vector.broadcast %61 : vector<1x1x128xf32> to vector<16x16x128xf32>
    %63 = arith.mulf %58, %62 : vector<16x16x128xf32>
    %64 = arith.addf %57, %63 : vector<16x16x128xf32>
    %65 = vector.extract_strided_slice %8 {offsets = [2, 9, 0], sizes = [16, 16, 128], strides = [1, 1, 1]} : vector<18x25x128xf32> to vector<16x16x128xf32>
    %c8_22 = arith.constant 8 : index
    %c0_23 = arith.constant 0 : index
    %66 = vector.load %arg2[%c8_22, %c0_23] : memref<9x128xf32, #tpu.memory_space<vmem>>, vector<1x128xf32>
    %67 = vector.shape_cast %66 : vector<1x128xf32> to vector<128xf32>
    %68 = vector.shape_cast %67 : vector<128xf32> to vector<1x1x128xf32>
    %69 = vector.broadcast %68 : vector<1x1x128xf32> to vector<16x16x128xf32>
    %70 = arith.mulf %65, %69 : vector<16x16x128xf32>
    %71 = arith.addf %64, %70 : vector<16x16x128xf32>
    %c0_24 = arith.constant 0 : index
    %c0_25 = arith.constant 0 : index
    %72 = vector.load %arg3[%c0_24, %c0_25] : memref<1x128xf32, #tpu.memory_space<vmem>>, vector<1x128xf32>
    %73 = vector.shape_cast %72 : vector<1x128xf32> to vector<128xf32>
    %74 = vector.shape_cast %73 : vector<128xf32> to vector<1x1x128xf32>
    %75 = vector.broadcast %74 : vector<1x1x128xf32> to vector<16x16x128xf32>
    %76 = arith.addf %71, %75 : vector<16x16x128xf32>
    %77 = vector.shape_cast %76 : vector<16x16x128xf32> to vector<256x128xf32>
    %c0_26 = arith.constant 0 : index
    %c0_27 = arith.constant 0 : index
    %78 = vector.load %arg4[%c0_26, %c0_27] : memref<128x128xf32, #tpu.memory_space<vmem>>, vector<128x128xf32>
    %cst_28 = arith.constant dense<0.000000e+00> : vector<256x128xf32>
    %79 = tpu.matmul %77, %78, %cst_28 {dimension_numbers = #tpu.dot_dimension_numbers<[1], [0], [0], [1], [0, 0, 1, 1], [], []>} : vector<256x128xf32>, vector<128x128xf32>, vector<256x128xf32> -> vector<256x128xf32>
    %c0_29 = arith.constant 0 : index
    %c0_30 = arith.constant 0 : index
    %80 = vector.load %arg5[%c0_29, %c0_30] : memref<1x128xf32, #tpu.memory_space<vmem>>, vector<1x128xf32>
    %81 = vector.shape_cast %80 : vector<1x128xf32> to vector<128xf32>
    %82 = vector.shape_cast %81 : vector<128xf32> to vector<1x128xf32>
    %83 = vector.broadcast %82 : vector<1x128xf32> to vector<256x128xf32>
    %84 = arith.mulf %79, %83 : vector<256x128xf32>
    %c0_31 = arith.constant 0 : index
    %c0_32 = arith.constant 0 : index
    %85 = vector.load %arg6[%c0_31, %c0_32] : memref<1x128xf32, #tpu.memory_space<vmem>>, vector<1x128xf32>
    %86 = vector.shape_cast %85 : vector<1x128xf32> to vector<128xf32>
    %87 = vector.shape_cast %86 : vector<128xf32> to vector<1x128xf32>
    %88 = vector.broadcast %87 : vector<1x128xf32> to vector<256x128xf32>
    %89 = arith.addf %84, %88 : vector<256x128xf32>
    %90 = vector.shape_cast %89 : vector<256x128xf32> to vector<16x16x128xf32>
    %c0_33 = arith.constant 0 : index
    %c0_34 = arith.constant 0 : index
    %c0_35 = arith.constant 0 : index
    %c0_36 = arith.constant 0 : index
    %91 = vector.load %arg7[%c0_33, %c0_34, %c0_35, %c0_36] : memref<1x16x16x128xf32, #tpu.memory_space<vmem>>, vector<1x16x16x128xf32>
    %92 = vector.shape_cast %91 : vector<1x16x16x128xf32> to vector<16x16x128xf32>
    %93 = vector.shape_cast %90 : vector<16x16x128xf32> to vector<1x16x16x128xf32>
    tpu.vector_store %arg7[%c0_33, %c0_34, %c0_35, %c0_36], %93 {strides = array<i32>} : memref<1x16x16x128xf32, #tpu.memory_space<vmem>>, vector<1x16x16x128xf32>,
    return
  }
  func.func @transform_0(%arg0: i32) -> (i32, i32, i32, i32) {
    %c0_i32 = arith.constant 0 : i32
    %c0_i32_0 = arith.constant 0 : i32
    %c0_i32_1 = arith.constant 0 : i32
    %c0_i32_2 = arith.constant 0 : i32
    return %arg0, %c0_i32, %c0_i32_0, %c0_i32_1 : i32, i32, i32, i32
  }
  func.func @transform_1(%arg0: i32) -> (i32, i32) {
    %c0_i32 = arith.constant 0 : i32
    %c0_i32_0 = arith.constant 0 : i32
    %c0_i32_1 = arith.constant 0 : i32
    return %c0_i32, %c0_i32_0 : i32, i32
  }
  func.func @transform_2(%arg0: i32) -> (i32, i32) {
    %c0_i32 = arith.constant 0 : i32
    %c0_i32_0 = arith.constant 0 : i32
    %c0_i32_1 = arith.constant 0 : i32
    return %c0_i32, %c0_i32_0 : i32, i32
  }
  func.func @transform_3(%arg0: i32) -> (i32, i32) {
    %c0_i32 = arith.constant 0 : i32
    %c0_i32_0 = arith.constant 0 : i32
    %c0_i32_1 = arith.constant 0 : i32
    return %c0_i32, %c0_i32_0 : i32, i32
  }
  func.func @transform_4(%arg0: i32) -> (i32, i32) {
    %c0_i32 = arith.constant 0 : i32
    %c0_i32_0 = arith.constant 0 : i32
    %c0_i32_1 = arith.constant 0 : i32
    return %c0_i32, %c0_i32_0 : i32, i32
  }
  func.func @transform_5(%arg0: i32) -> (i32, i32) {
    %c0_i32 = arith.constant 0 : i32
    %c0_i32_0 = arith.constant 0 : i32
    %c0_i32_1 = arith.constant 0 : i32
    return %c0_i32, %c0_i32_0 : i32, i32
  }
  func.func @transform_6(%arg0: i32) -> (i32, i32, i32, i32) {
    %c0_i32 = arith.constant 0 : i32
    %c0_i32_0 = arith.constant 0 : i32
    %c0_i32_1 = arith.constant 0 : i32
    %c0_i32_2 = arith.constant 0 : i32
    return %arg0, %c0_i32, %c0_i32_0, %c0_i32_1 : i32, i32, i32, i32
  }
}

</mosaic_0001>

<bundles_post_ra>
// kernel: tpu_custom_call.1
= control target key start
LH: loop header
LB: loop body
LE: loop exit
PB: predicated region body
PF: predicated region fallthrough
CT: control target
= control target key end

     0   :  { %11 = vsyncpa [#allocation4], 0  ;;  %s5326_s0 = inlined_call_operand.hbm [shape: f32[2,16,16,128], index: 0, kind: input, shape index: {}]   ;;  %s5327_s1 = inlined_call_operand.hbm [shape: f32[9,128], index: 1, kind: input, shape index: {}]   ;;  %s5328_s2 = inlined_call_operand.vmem [shape: f32[1,128], index: 2, kind: input, shape index: {}]   ;;  %s5329_s3 = inlined_call_operand.hbm [shape: f32[128,128], index: 3, kind: input, shape index: {}]   ;;  %s5330_s4 = inlined_call_operand.vmem [shape: f32[1,128], index: 4, kind: input, shape index: {}]   ;;  %s5331_s5 = inlined_call_operand.vmem [shape: f32[1,128], index: 5, kind: input, shape index: {}]   ;;  %s5332_s6 = inlined_call_operand.hbm [shape: f32[2,16,16,128], index: 6, kind: output, shape index: {}]  }
   0x1   :  { %13 = vsyncpa [#allocation4 + $0x1], 0 }
   0x2   :  { %14 = vsyncpa [#allocation7], 0 }
   0x3   :  { %15 = vsyncpa [#allocation5], 0 }
   0x4   :  { %17 = vsyncpa [#allocation5 + $0x1], 0  ;;  %s3474_s21 = smov 0   ;;  %s3476_s22 = smov 0  }
   0x5   :  { %s3478_s23 = smov 0   ;;  %s3480_s24 = smov 0  }
   0x6 LB: > { %s3495_s25 = sadd.s32 4294967295, %s3428_s24   ;;  %s2988_s26 = sadd.s32 4294967294, %s3428_s24   ;;  %s3428_s24 = sphi %s3480_s24, %s5407_s24   ;;  %s3424_s23 = sphi %s3478_s23, %s5406_s23   ;;  %s3420_s22 = sphi %s3476_s22, %s5405_s22   ;;  %s3416_s21 = sphi %s3474_s21, %s5404_s21  }
   0x7   : > { %p43_p0 = scmp.ne.s32.totalorder %s3420_s22, %s3416_s21  ;;  %p5333_p1 = scmp.eq.s32.totalorder %s3495_s25, 0 }
   0x8   : > { %p172_p2 = scmp.eq.s32.totalorder %s3495_s25, 1  ;;  %p178_p3 = scmp.eq.s32.totalorder %s2988_s26, 1 }
   0x9   : > { %p3504_p4 = por %p5333_p1, %p43_p0  ;;  %p2989_p5 = scmp.ge.s32.totalorder %s3428_s24, 1 }
   0xa   : > { %p3509_p6 = por %p178_p3, %p43_p0  ;;  %p185_p7 = scmp.lt.s32.totalorder %s3428_s24, 3 }
   0xb   : > { %s5353_s27 = scalar_select %p3504_p4, 1, 0 }
   0xc   : > { %s5354_s28 = scalar_select %p3509_p6, 1, 0 }
   0xd   : > { %p3514_p8 = pnand %p2989_p5, %p185_p7  ;;  %s3430_s30 = smov [#allocation6]  }
   0xe   : > { %s197_s7 = sshll.u32 %s3430_s30, 4  ;;  %s3431_s9 = smov [#allocation8]   ;;  %s198_s7 = int_to_ptr.vmem [resolvable:$true] %s197_s7 }
   0xf   : > { %s5355_s29 = scalar_select %p3514_p8, 1, 0 }
  0x10   : > { %p3192_p9 = pneg %p3514_p8  ;;  %s213_s10 = sshll.u32 %s3431_s9, 4  ;;  %s214_s10 = int_to_ptr.vmem [resolvable:$true] %s213_s10 }
  0x11   : > { %s3291_s11 = scalar_lea.vmem %s198_s7, 256  ;;  %p3299_p5 = scmp.lt.s32.totalorder %s198_s7, %s198_s7 }
  0x12   : > { %p3523_p11 = pnand %p3192_p9, %p5333_p1  ;;  %p3292_p13 = scmp.ne.s32.totalorder %s198_s7, %s3291_s11 }
  0x13   : > { %p3300_p7 = scmp.lt.s32.totalorder %s3291_s11, %s3291_s11 }
  0x14   : > { %p3282_p12 = pneg %p3523_p11 }
  0x15   : > { %p3301_p10 = por %p3300_p7, %p3299_p5 }
  0x16   : > { %p3294_p0 = pnand %p3292_p13, %p3282_p12 }
  0x18   : > { %p3295_p3 = pneg %p3294_p0 }
  0x1a   : > { %p3302_p9 = pnand %p3301_p10, %p3295_p3 }
  0x1c   : > { %3305 = shalt.err (!%p3302_p9)
}
  0x1d   : > { %s5334_s12 = smov 128   ;;  %s5335_s13 = smov 8  }
  0x1e   : > { %3195 = dma.hbm_to_vmem [thread:$0]  (!%p3523_p11), %s5327_s1, 256, %s198_s7, [#allocation7], %s5334_s12, %s5334_s12, %s5335_s13  }
  0x1f   : > { %s3317_s16 = scalar_lea.vmem %s214_s10, 2048  ;;  %p3325_p10 = scmp.lt.s32.totalorder %s214_s10, %s214_s10 }
  0x20   : > { %p3318_p13 = scmp.ne.s32.totalorder %s214_s10, %s3317_s16  ;;  %p3326_p3 = scmp.lt.s32.totalorder %s3317_s16, %s3317_s16 }
  0x22   : > { %p3320_p0 = pnand %p3318_p13, %p3282_p12  ;;  %p3327_p7 = por %p3326_p3, %p3325_p10 }
  0x24   : > { %p3321_p5 = pneg %p3320_p0 }
  0x26   : > { %p3328_p9 = pnand %p3327_p7, %p3321_p5 }
  0x28   : > { %3331 = shalt.err (!%p3328_p9)
}
  0x29   : > { %3198 = dma.hbm_to_vmem [thread:$0]  (!%p3523_p11), %s5329_s3, 2048, %s214_s10, [#allocation7], %s5334_s12, %s5334_s12, %s5335_s13  }
  0x2a   : > { %s3552_s19 = sadd.s32 1, %s3428_s24   ;;  %s30_s20 = sadd.s32 1, %s3424_s23 }
  0x2b   : > { %s27_s26 = ssub.s32 %s3428_s24, %s3552_s19  ;;  %p37_p12 = scmp.ne.s32.totalorder %s3424_s23, %s3420_s22 }
  0x2c   : > { %p28_p13 = scmp.eq.s32.totalorder %s27_s26, 0  ;;  %p38_p0 = scmp.eq.s32.totalorder %s3428_s24, 0 }
  0x2d   : > { %p3562_p5 = por %p172_p2, %p37_p12  ;;  %p3209_p10 = scmp.lt.s32.totalorder %s3428_s24, 2 }
  0x2e   : > { %s3568_s7 = scalar_select %p28_p13, %s3424_s23, %s30_s20  }
  0x2f   : > { %s5357_s30 = scalar_select %p3562_p5, 1, 0 }
  0x30   : > { %p39_p3 = por %p38_p0, %p37_p12  ;;  %s233_s8 = sand.u32 1, %s3424_s23  }
  0x31   : > { %s2993_s9 = sshll.u32 %s233_s8, 8  ;;  %s3018_s10 = sshll.u32 %s3428_s24, 12 }
  0x32   : > { %s3575_s15 = scalar_lea.hbm %s5326_s0, %s3018_s10  ;;  %s237_s16 = scalar_lea.vmem [#allocation3], %s2993_s9 }
  0x33   : > { %s244_s17 = sshll.u32 %s237_s16, 4  ;;  %p3579_p2 = pnand %p3209_p10, %p39_p3  ;;  %s3577_s17 = int_to_ptr.vmem [resolvable:$true] %s244_s17 }
  0x34   : > { %s3583_s20 = scalar_lea.sflag [#allocation4], %s233_s8  ;;  %s3332_s26 = scalar_lea.hbm %s3575_s15, 4096 }
  0x35   : > { %p3333_p11 = scmp.ne.s32.totalorder %s3575_s15, %s3332_s26  ;;  %p3334_p7 = pneg %p3579_p2 }
  0x36   : > { %s3337_s9 = scalar_lea.hbm %s5326_s0, 8192  ;;  %p3338_p13 = scmp.lt.s32.totalorder %s3575_s15, %s5326_s0 }
  0x37   : > { %p3335_p9 = pnand %p3334_p7, %p3333_p11  ;;  %p3339_p0 = scmp.lt.s32.totalorder %s3337_s9, %s3332_s26 }
  0x39   : > { %p3336_p12 = pneg %p3335_p9  ;;  %p3340_p10 = por %p3339_p0, %p3338_p13 }
  0x3b   : > { %p3341_p3 = pnand %p3340_p10, %p3336_p12 }
  0x3d   : > { %3344 = shalt.err (!%p3341_p3)
}
  0x3e   : > { %s3345_s8 = scalar_lea.vmem %s3577_s17, 4096  ;;  %s3434_s12 = smov [#allocation3]  }
  0x3f   : > { %p3346_p1 = scmp.ne.s32.totalorder %s3577_s17, %s3345_s8  ;;  %s3350_s13 = sshll.u32 %s3434_s12, 4  ;;  %s3351_s13 = int_to_ptr.vmem [resolvable:$false] %s3350_s13 }
  0x40   : > { %s3352_s10 = scalar_lea.vmem %s3351_s13, 8192  ;;  %p3353_p9 = scmp.lt.s32.totalorder %s3577_s17, %s3351_s13 }
  0x41   : > { %p3348_p6 = pnand %p3346_p1, %p3334_p7  ;;  %p3354_p5 = scmp.lt.s32.totalorder %s3352_s10, %s3345_s8 }
  0x43   : > { %p3349_p11 = pneg %p3348_p6  ;;  %p3355_p4 = por %p3354_p5, %p3353_p9 }
  0x45   : > { %p3356_p8 = pnand %p3355_p4, %p3349_p11 }
  0x47   : > { %3359 = shalt.err (!%p3356_p8)
}
  0x48   : > { %s5359_s26 = smov 8   ;;  %s5360_s11 = smov 128  }
  0x49   : > { %3202 = dma.hbm_to_vmem [thread:$0]  (!%p3579_p2), %s3575_s15, 4096, %s3577_s17, %s3583_s20, %s5360_s11, %s5360_s11, %s5359_s26  }
  0x4a   : > { %p5361_p1 = scmp.ne.s32.totalorder %s5355_s29, 0 }
  0x4c   : > { %256 = sbr.rel (%p5361_p1) target bundleno = 640 (0x280), region = 44 }
  0x51   : > { %s3610_s12 = sand.u32 1, %s3420_s22   ;;  %p5362_p4 = scmp.ne.s32.totalorder %s5353_s27, 0 }
  0x52   : > { %s2997_s13 = sshll.u32 %s3610_s12, 8  ;;  %s259_s9 = scalar_lea.sflag [#allocation4], %s3610_s12 }
  0x53   : > { %s3616_s18 = scalar_lea.vmem [#allocation3], %s2997_s13 }
  0x54   : > { %3403 = dma.done.wait (%p5362_p4), %s259_s9, 4096  }
  0x55   : > { %3405 = vsyncadd (%p5362_p4), %s259_s9, 4294963200  ;;  %p5363_p6 = scmp.eq.s32.totalorder %s3495_s25, 0 }
  0x57   : > { %3407 = dma.done.wait (%p5363_p6), [#allocation7], 2304   ;;  %p5364_p8 = pmov %p5363_p6 }
  0x58   : > { %v3435_v0 = vmov 0.0   ;;  %v2546_v1 = vld [vmem:[#allocation8 + $0x78] sm:$0xff]  ;;  %v2545_v2 = vld [vmem:[#allocation8 + $0x70] sm:$0xff]  ;;  %v2544_v3 = vld [vmem:[#allocation8 + $0x68] sm:$0xff]  ;;  %vm710_vm0 = vcmask 1046528   ;;  %vm956_vm1 = vcmask 1045504  }
  0x59   : > { %3409 = vsyncadd (%p5364_p8), [#allocation7], 4294964992  ;;  %363 = vst [vmem:[#allocation2 + $0xc8] sm:$0xff] %v3435_v0  ;;  %3068 = vmatprep.subr.mxu0 %v2546_v1  ;;  %3148 = vmatprep.subr.mxu1 %v2546_v1  ;;  %v2543_v4 = vld [vmem:[#allocation8 + $0x60] sm:$0xff]  ;;  %v2542_v5 = vld [vmem:[#allocation8 + $0x58] sm:$0xff]  ;;  %vm2418_vm2 = vcmask 1040384  }
  0x5a   : > { %366 = vst [vmem:[#allocation2 + $0x28] sm:$0x1] %v3435_v0  ;;  %370 = vst [vmem:[#allocation2 + $0x120] sm:$0x1] %v3435_v0  ;;  %3069 = vmatpush3.msra.mxu0 %v2546_v1  ;;  %3164 = vmatpush3.msra.mxu1 %v2546_v1  ;;  %v299_v6 = vld [vmem:[%s3616_s18] sm:$0xff]  ;;  %v300_v7 = vld [vmem:[%s3616_s18 + $0x8] sm:$0xff] }
  0x5b   : > { %374 = vst [vmem:[#allocation2 + $0x158] sm:$0x1] %v3435_v0  ;;  %378 = vst [vmem:[#allocation2 + $0xb8] sm:$0x1] %v3435_v0  ;;  %3070 = vmatprep.subr.mxu0 %v2545_v2  ;;  %3149 = vmatprep.subr.mxu1 %v2545_v2  ;;  %v2541_v8 = vld [vmem:[#allocation8 + $0x50] sm:$0xff]  ;;  %v301_v9 = vld [vmem:[%s3616_s18 + $0x10] sm:$0xff] }
  0x5c   : > { %382 = vst [vmem:[#allocation2 + $0x1c0] sm:$0x1] %v3435_v0  ;;  %386 = vst [vmem:[#allocation2 + $0x1b8] sm:$0x1] %v3435_v0  ;;  %3071 = vmatpush3.msra.mxu0 %v2545_v2  ;;  %3165 = vmatpush3.msra.mxu1 %v2545_v2  ;;  %v302_v10 = vld [vmem:[%s3616_s18 + $0x18] sm:$0xff]  ;;  %v3630_v11 = vmax.f32 %v299_v6, 0.0 }
  0x5d   : > { %390 = vst [vmem:[#allocation2 + $0x38] sm:$0x1] %v3435_v0  ;;  %394 = vst [vmem:[#allocation2 + $0x1c8] sm:$0x1] %v3435_v0  ;;  %3072 = vmatprep.subr.mxu0 %v2544_v3  ;;  %3150 = vmatprep.subr.mxu1 %v2544_v3  ;;  %v3632_v12 = vmax.f32 %v300_v7, 0.0  ;;  %v3636_v14 = vmax.f32 %v301_v9, 0.0 }
  0x5e   : > { %398 = vst [vmem:[#allocation2 + $0x170] sm:$0x1] %v3435_v0  ;;  %402 = vst [vmem:[#allocation2 + $0x1f0] sm:$0x1] %v3435_v0  ;;  %3073 = vmatpush3.msra.mxu0 %v2544_v3  ;;  %3166 = vmatpush3.msra.mxu1 %v2544_v3  ;;  %v3634_v13 = vld [vmem:[#allocation6] ss:$0 sm:$0xff] }
  0x5f   : > { %406 = vst [vmem:[#allocation2 + $0x160] sm:$0x1] %v3435_v0  ;;  %410 = vst [vmem:[#allocation2 + $0x1b0] sm:$0x1] %v3435_v0  ;;  %3074 = vmatprep.subr.mxu0 %v2543_v4  ;;  %3151 = vmatprep.subr.mxu1 %v2543_v4  ;;  %v3638_v15 = vmax.f32 %v302_v10, 0.0  ;;  %v3641_v16 = vmul.f32 0.0, %v3634_v13  ;;  %v3659_v24 = vmul.f32 %v3634_v13, %v3630_v11 }
  0x60   : > { %414 = vst [vmem:[#allocation2 + $0x230] sm:$0x1] %v3435_v0  ;;  %418 = vst [vmem:[#allocation2 + $0x200] sm:$0x1] %v3435_v0  ;;  %v3643_v17 = vld [vmem:[#allocation6 + $0x1] ss:$0 sm:$0xff]  ;;  %3075 = vmatpush3.msra.mxu0 %v2543_v4  ;;  %3167 = vmatpush3.msra.mxu1 %v2543_v4 }
  0x61   : > { %422 = vst [vmem:[#allocation2 + $0x208] sm:$0x1] %v3435_v0  ;;  %426 = vst [vmem:[#allocation2 + $0xc0] sm:$0x1] %v3435_v0  ;;  %v3645_v18 = vld [vmem:[#allocation6 + $0x2] ss:$0 sm:$0xff]  ;;  %3076 = vmatprep.subr.mxu0 %v2542_v5  ;;  %3152 = vmatprep.subr.mxu1 %v2542_v5  ;;  %v3663_v25 = vmul.f32 %v3643_v17, %v3636_v14 }
  0x62   : > { %430 = vst [vmem:[#allocation2 + $0x20] sm:$0x1] %v3435_v0  ;;  %434 = vst [vmem:[#allocation2 + $0xa0] sm:$0x1] %v3435_v0  ;;  %v646_v19 = vmul.f32 0.0, %v3643_v17  ;;  %v3649_v20 = vmul.f32 0.0, %v3645_v18  ;;  %3077 = vmatpush3.msra.mxu0 %v2542_v5  ;;  %3168 = vmatpush3.msra.mxu1 %v2542_v5 }
  0x63   : > { %v3651_v21 = vld [vmem:[#allocation6 + $0x3] ss:$0 sm:$0xff]  ;;  %v3653_v22 = vld [vmem:[#allocation6 + $0x4] ss:$0 sm:$0xff]  ;;  %v3655_v23 = vld [vmem:[#allocation6 + $0x5] ss:$0 sm:$0xff]  ;;  %3078 = vmatprep.subr.mxu0 %v2541_v8  ;;  %3153 = vmatprep.subr.mxu1 %v2541_v8 }
  0x64   : > { %v3666_v26 = vmul.f32 0.0, %v3651_v21  ;;  %v1139_v27 = vmul.f32 %v3651_v21, %v3630_v11  ;;  %v3670_v28 = vld [vmem:[#allocation6 + $0x6] ss:$0 sm:$0xff]  ;;  %v2540_v29 = vld [vmem:[#allocation8 + $0x48] sm:$0xff]  ;;  %v711_v30 = vrot.slane %v646_v19, 1  ;;  %v957_v31 = vrot.slane %v3649_v20, 2  ;;  %3079 = vmatpush3.msra.mxu0 %v2541_v8  ;;  %3169 = vmatpush3.msra.mxu1 %v2541_v8 }
  0x65   : > { %v1239_v32 = vmul.f32 %v3653_v22, %v3630_v11  ;;  %v3677_v33 = vmul.f32 %v3653_v22, %v3632_v12  ;;  %v5341_v34 = vrot.slane %v3663_v25, 1  ;;  %v3682_v35 = vmul.f32 %v3655_v23, %v3630_v11  ;;  %v3691_v38 = vld [vmem:[#allocation6 + $0x7] ss:$0 sm:$0xff]  ;;  %v2539_v39 = vld [vmem:[#allocation8 + $0x40] sm:$0xff]  ;;  %3080 = vmatprep.subr.mxu0 %v2540_v29  ;;  %3154 = vmatprep.subr.mxu1 %v2540_v29  ;;  %v3704_v46 = vld [vmem:[#allocation6 + $0x8] ss:$0 sm:$0xff] }
  0x66   : > { %v3686_v36 = vmul.f32 %v3655_v23, %v3632_v12  ;;  %v3689_v37 = vmul.f32 0.0, %v3670_v28  ;;  %v3694_v40 = vadd.f32 %v711_v30, %v3641_v16  ;;  %v313_v42 = vld [vmem:[%s3616_s18 + $0x70] sm:$0xff]  ;;  %3081 = vmatpush3.msra.mxu0 %v2540_v29  ;;  %3170 = vmatpush3.msra.mxu1 %v2540_v29  ;;  %v2538_v47 = vld [vmem:[#allocation8 + $0x38] sm:$0xff]  ;;  %v3712_v50 = vmul.f32 %v3670_v28, %v3636_v14  ;;  %v475_v55 = vld [vmem:[#allocation2 + $0x120] sm:$0x1]  ;;  %s5180_s11 = scalar_lea.vmem [#allocation9], %s2997_s13 }
  0x67   : > { %v1303_v41 = vrot.slane %v1239_v32, 1  ;;  %v3700_v43 = vadd.f32 %v5341_v34, %v3641_v16  ;;  %v1304_v44 = vrot.slane %v3677_v33, 1  ;;  %v1548_v45 = vrot.slane %v3682_v35, 2  ;;  %v471_v52 = vld [vmem:[#allocation2 + $0x28] sm:$0x1]  ;;  %3082 = vmatprep.subr.mxu0 %v2539_v39  ;;  %3155 = vmatprep.subr.mxu1 %v2539_v39  ;;  %v2537_v58 = vld [vmem:[#allocation8 + $0x30] sm:$0xff] }
  0x68   : > { %v1085_v48 = vadd.f32 %v957_v31, %v3694_v40  ;;  %v1549_v49 = vrot.slane %v3686_v36, 2  ;;  %v3716_v51 = vmul.f32 %v3691_v38, %v3636_v14  ;;  %v3723_v54 = vmul.f32 %v3691_v38, %v3638_v15  ;;  %v3725_v56 = vld [vmem:[#allocation2 + $0x158] sm:$0x1]  ;;  %3083 = vmatpush3.msra.mxu0 %v2539_v39  ;;  %3171 = vmatpush3.msra.mxu1 %v2539_v39  ;;  %v315_v29 = vld [vmem:[%s3616_s18 + $0x80] sm:$0xff]  ;;  %v2535_v30 = vld [vmem:[#allocation8 + $0x20] sm:$0xff]  ;;  %s3019_s13 = sshll.u32 %s3495_s25, 12 }
  0x69   : > { %v1305_v53 = vsel %vm710_vm0, %v1303_v41, %v1304_v44  ;;  %v3727_v57 = vmax.f32 %v313_v42, 0.0  ;;  %v3736_v62 = vmul.f32 %v3704_v46, %v3636_v14  ;;  %3084 = vmatprep.subr.mxu0 %v2538_v47  ;;  %3156 = vmatprep.subr.mxu1 %v2538_v47  ;;  %v3741_v1 = vmul.f32 %v3704_v46, %v3638_v15  ;;  %v2536_v3 = vld [vmem:[#allocation8 + $0x28] sm:$0xff]  ;;  %v316_v42 = vld [vmem:[%s3616_s18 + $0x88] sm:$0xff]  ;;  %v2531_v33 = vld [vmem:[#allocation8] sm:$0xff]  ;;  %s2896_s9 = sshll.u32 %s5180_s11, 4  ;;  %s5278_s29 = scalar_lea.hbm %s5332_s6, %s3019_s13  ;;  %s5280_s9 = int_to_ptr.vmem [resolvable:$true] %s2896_s9 }
  0x6a   : > { %v1186_v59 = vadd.f32 %v3666_v26, %v1085_v48  ;;  %v1550_v60 = vsel %vm956_vm1, %v1548_v45, %v1549_v49  ;;  %v1894_v61 = vrot.slane %v3716_v51, 1  ;;  %v1187_v63 = vadd.f32 %v1139_v27, %v1085_v48  ;;  %3085 = vmatpush3.msra.mxu0 %v2538_v47  ;;  %3172 = vmatpush3.msra.mxu1 %v2538_v47  ;;  %v314_v8 = vld [vmem:[%s3616_s18 + $0x78] sm:$0xff]  ;;  %s2883_s25 = scalar_lea.sflag [#allocation5], %s3610_s12  ;;  %s3360_s15 = scalar_lea.vmem %s5280_s9, 4096 }
  0x6b   : > { %v1895_v0 = vrot.slane %v3723_v54, 1  ;;  %v862_v2 = vmul.f32 %v3645_v18, %v471_v52  ;;  %450 = vst [vmem:[#allocation2 + $0xf8] sm:$0xff] %v3727_v57  ;;  %v2139_v5 = vrot.slane %v3736_v62, 2  ;;  %v3747_v6 = vmul.f32 %v3645_v18, %v475_v55  ;;  %3086 = vmatprep.subr.mxu0 %v2537_v58  ;;  %3157 = vmatprep.subr.mxu1 %v2537_v58  ;;  %v2534_v52 = vld [vmem:[#allocation8 + $0x18] sm:$0xff]  ;;  %p3361_p5 = scmp.ne.s32.totalorder %s5280_s9, %s3360_s15  ;;  %p5401_p2 = scmp.ne.s32.totalorder %s5357_s30, 0 }
  0x6c   : > { %v1399_v4 = vadd.f32 %v1303_v41, %v1186_v59  ;;  %v3751_v7 = vmul.f32 %v3645_v18, %v3725_v56  ;;  %v1400_v9 = vadd.f32 %v1305_v53, %v1187_v63  ;;  %v2140_v19 = vrot.slane %v3741_v1, 2  ;;  %3087 = vmatpush3.msra.mxu0 %v2537_v58  ;;  %3173 = vmatpush3.msra.mxu1 %v2537_v58  ;;  %v318_v63 = vld [vmem:[%s3616_s18 + $0x98] sm:$0xff]  ;;  %s3436_s17 = smov [#allocation9]  }
  0x6d   : > { %v1896_v10 = vsel %vm710_vm0, %v1894_v61, %v1895_v0  ;;  %v960_v27 = vrot.slane %v862_v2, 2  ;;  %v965_v35 = vrot.slane %v3747_v6, 2  ;;  %v1140_v41 = vmul.f32 %v3651_v21, %v3632_v12  ;;  %3088 = vmatprep.subr.mxu0 %v2536_v3  ;;  %3158 = vmatprep.subr.mxu1 %v2536_v3  ;;  %p3362_p7 = pnand %p3361_p5, %p5401_p2  ;;  %s3364_s20 = sshll.u32 %s3436_s17, 4  ;;  %s3365_s20 = int_to_ptr.vmem [resolvable:$false] %s3364_s20 }
  0x6e   : > { %v1676_v32 = vadd.f32 %v1548_v45, %v1399_v4  ;;  %v1677_v47 = vadd.f32 %v1550_v60, %v1400_v9  ;;  %v2141_v48 = vsel %vm956_vm1, %v2139_v5, %v2140_v19  ;;  %v3772_v51 = vmax.f32 %v314_v8, 0.0  ;;  %3089 = vmatpush3.msra.mxu0 %v2536_v3  ;;  %3174 = vmatpush3.msra.mxu1 %v2536_v3  ;;  %v317_v60 = vld [vmem:[%s3616_s18 + $0x90] sm:$0xff]  ;;  %s3366_s14 = scalar_lea.vmem %s3365_s20, 8192  ;;  %p3367_p13 = scmp.lt.s32.totalorder %s5280_s9, %s3365_s20 }
  0x6f   : > { %v961_v45 = vsel %vm956_vm1, %v957_v31, %v960_v27  ;;  %v1454_v59 = vmul.f32 %v3655_v23, %v475_v55  ;;  %v3779_v2 = vmax.f32 %v315_v29, 0.0  ;;  %3090 = vmatprep.subr.mxu0 %v2535_v30  ;;  %3159 = vmatprep.subr.mxu1 %v2535_v30  ;;  %v3784_v31 = vmul.f32 %v3655_v23, %v3725_v56  ;;  %v303_v27 = vld [vmem:[%s3616_s18 + $0x20] sm:$0xff]  ;;  %p3363_p12 = pneg %p3362_p7  ;;  %p3368_p0 = scmp.lt.s32.totalorder %s3366_s14, %s3360_s15 }
  0x70   : > { %v1777_v53 = vadd.f32 %v3689_v37, %v1676_v32  ;;  %v1087_v58 = vadd.f32 %v961_v45, %v3694_v40  ;;  %v1778_v20 = vadd.f32 %v3712_v50, %v1677_v47  ;;  %v1731_v3 = vmul.f32 %v3670_v28, %v3638_v15  ;;  %451 = vst [vmem:[#allocation2 + $0x78] sm:$0xff] %v3772_v51  ;;  %v2533_v40 = vld [vmem:[#allocation8 + $0x10] sm:$0xff] }
  0x71   : > { %v3788_v4 = vmax.f32 %v316_v42, 0.0  ;;  %3091 = vmatpush3.msra.mxu0 %v2535_v30  ;;  %3175 = vmatpush3.msra.mxu1 %v2535_v30  ;;  %v1551_v9 = vrot.slane %v1454_v59, 2  ;;  %v2045_v50 = vmul.f32 %v3704_v46, %v3725_v56  ;;  %452 = vst [vmem:[#allocation2 + $0xe0] sm:$0xff] %v3779_v2  ;;  %v3798_v32 = vld [vmem:[%s5328_s2] ss:$0 sm:$0xff]  ;;  %v1556_v30 = vrot.slane %v3784_v31, 2  ;;  %p3369_p10 = por %p3368_p0, %p3367_p13 }
  0x72   : > { %v1990_v55 = vadd.f32 %v1894_v61, %v1777_v53  ;;  %v1188_v8 = vadd.f32 %v1140_v41, %v1087_v58  ;;  %3092 = vmatprep.subr.mxu0 %v2534_v52  ;;  %3160 = vmatprep.subr.mxu1 %v2534_v52  ;;  %v1991_v29 = vadd.f32 %v1896_v10, %v1778_v20  ;;  %v3801_v42 = vmax.f32 %v317_v60, 0.0  ;;  %v304_v56 = vld [vmem:[%s3616_s18 + $0x28] sm:$0xff]  ;;  %v2532_v41 = vld [vmem:[#allocation8 + $0x8] sm:$0xff] }
  0x73   : > { %v3803_v61 = vmax.f32 %v318_v63, 0.0  ;;  %453 = vst [vmem:[#allocation2 + $0x1e0] sm:$0xff] %v3788_v4  ;;  %3093 = vmatpush3.msra.mxu0 %v2534_v52  ;;  %3176 = vmatpush3.msra.mxu1 %v2534_v52  ;;  %v1552_v45 = vsel %vm956_vm1, %v1549_v49, %v1551_v9  ;;  %v2142_v53 = vrot.slane %v2045_v50, 2  ;;  %v570_v59 = vmul.f32 %v3634_v13, %v3727_v57  ;;  %p3370_p3 = pnand %p3369_p10, %p3363_p12 }
  0x74   : > { %v2267_v10 = vadd.f32 %v2139_v5, %v1990_v55  ;;  %v1401_v47 = vadd.f32 %v1304_v44, %v1188_v8  ;;  %3094 = vmatprep.subr.mxu0 %v2533_v40  ;;  %3161 = vmatprep.subr.mxu1 %v2533_v40  ;;  %v2268_v58 = vadd.f32 %v2141_v48, %v1991_v29  ;;  %v3818_v60 = vmax.f32 %v303_v27, 0.0 }
  0x75   : > { %v662_v52 = vmul.f32 %v3643_v17, %v3727_v57  ;;  %3095 = vmatpush3.msra.mxu0 %v2533_v40  ;;  %3177 = vmatpush3.msra.mxu1 %v2533_v40  ;;  %v2143_v49 = vsel %vm956_vm1, %v2140_v19, %v2142_v53  ;;  %v3824_v62 = vmax.f32 %v304_v56, 0.0  ;;  %v3829_v48 = vmul.f32 %v3643_v17, %v3772_v51 }
  0x76   : > { %v2322_v44 = vadd.f32 %v3798_v32, %v2267_v10  ;;  %v1678_v36 = vadd.f32 %v1552_v45, %v1401_v47  ;;  %3096 = vmatprep.subr.mxu0 %v2532_v41  ;;  %3162 = vmatprep.subr.mxu1 %v2532_v41  ;;  %v2323_v5 = vadd.f32 %v3798_v32, %v2268_v58 }
  0x77   : > { %v3833_v63 = vmul.f32 %v3643_v17, %v3801_v42  ;;  %v735_v20 = vrot.slane %v662_v52, 1  ;;  %3097 = vmatpush3.msra.mxu0 %v2532_v41  ;;  %3178 = vmatpush3.msra.mxu1 %v2532_v41  ;;  %v884_v19 = vmul.f32 %v3645_v18, %v3727_v57  ;;  %v3839_v55 = vmul.f32 %v3645_v18, %v3772_v51 }
  0x78   : > { %v2419_v1 = vrot.slane %v2322_v44, 7  ;;  %v1779_v40 = vadd.f32 %v1731_v3, %v1678_v36  ;;  %3098 = vmatprep.subr.mxu0 %v2531_v33  ;;  %v2420_v8 = vrot.slane %v2323_v5, 7  ;;  %3163 = vmatprep.subr.mxu1 %v2531_v33  ;;  %v736_v9 = vrot.slane %v3829_v48, 1 }
  0x79   : > { %v5339_v50 = vrot.slane %v3833_v63, 1  ;;  %v831_v27 = vadd.f32 %v735_v20, %v3641_v16  ;;  %3099 = vmatpush3.msra.mxu0 %v2531_v33  ;;  %3179 = vmatpush3.msra.mxu1 %v2531_v33  ;;  %v997_v29 = vrot.slane %v884_v19, 2  ;;  %v998_v57 = vrot.slane %v3839_v55, 2 }
  0x7a   : > { %v1992_v3 = vadd.f32 %v1895_v0, %v1779_v40  ;;  %v1163_v56 = vmul.f32 %v3651_v21, %v3779_v2  ;;  %v2421_v41 = vsel %vm2418_vm2, %v2419_v1, %v2420_v8  ;;  %v737_v10 = vsel %vm710_vm0, %v735_v20, %v736_v9 }
  0x7b   : > { %v3854_v47 = vadd.f32 %v5339_v50, %v3641_v16  ;;  %v1255_v54 = vmul.f32 %v3653_v22, %v3779_v2  ;;  %3100 = vmatprep.mubr.f32.mxu0 %v2421_v41  ;;  %v832_v45 = vadd.f32 %v737_v10, %v570_v59  ;;  %v999_v53 = vsel %vm956_vm1, %v997_v29, %v998_v57  ;;  %v503_v41 = vld [vmem:[#allocation2 + $0x170] sm:$0x1] }
  0x7c   : > { %v2269_v0 = vadd.f32 %v2143_v49, %v1992_v3  ;;  %v1109_v58 = vadd.f32 %v997_v29, %v831_v27  ;;  %v3861_v52 = vmul.f32 %v3653_v22, %v3788_v4  ;;  %v1476_v44 = vmul.f32 %v3655_v23, %v3779_v2 }
  0x7d   : > { %v1327_v33 = vrot.slane %v1255_v54, 1  ;;  %v1477_v36 = vmul.f32 %v3655_v23, %v3788_v4  ;;  %v1110_v48 = vadd.f32 %v999_v53, %v832_v45  ;;  %v1754_v59 = vmul.f32 %v3670_v28, %v3801_v42  ;;  %v507_v53 = vld [vmem:[#allocation2 + $0x1f0] sm:$0x1] }
  0x7e   : > { %v2324_v5 = vadd.f32 %v3798_v32, %v2269_v0  ;;  %v1210_v49 = vadd.f32 %v3666_v26, %v1109_v58  ;;  %v1328_v20 = vrot.slane %v3861_v52, 1  ;;  %v1588_v1 = vrot.slane %v1476_v44, 2 }
  0x7f   : > { %v1589_v40 = vrot.slane %v1477_v36, 2  ;;  %v1846_v19 = vmul.f32 %v3691_v38, %v3801_v42  ;;  %v1211_v27 = vadd.f32 %v1163_v56, %v1110_v48  ;;  %v3876_v29 = vmul.f32 %v3691_v38, %v3803_v61  ;;  %v511_v36 = vld [vmem:[#allocation2 + $0x160] sm:$0x1] }
  0x80   : > { %v2422_v55 = vrot.slane %v2324_v5, 7  ;;  %v1423_v3 = vadd.f32 %v1327_v33, %v1210_v49  ;;  %v1329_v10 = vsel %vm710_vm0, %v1327_v33, %v1328_v20  ;;  %v2067_v45 = vmul.f32 %v3704_v46, %v3801_v42 }
  0x81   : > { %v1590_v54 = vsel %vm956_vm1, %v1588_v1, %v1589_v40  ;;  %v1918_v0 = vrot.slane %v1846_v19, 1  ;;  %v1424_v52 = vadd.f32 %v1329_v10, %v1211_v27  ;;  %v1919_v56 = vrot.slane %v3876_v29, 1 }
  0x82   : > { %v2423_v58 = vsel %vm2418_vm2, %v2420_v8, %v2422_v55  ;;  %v1700_v44 = vadd.f32 %v1588_v1, %v1423_v3  ;;  %v2068_v5 = vmul.f32 %v3704_v46, %v3803_v61  ;;  %v2179_v48 = vrot.slane %v2067_v45, 2 }
  0x83   : > { %3101 = vmatmul.mubr.f32.vlgmr.msra.gmra.mxu0 %v2423_v58  ;;  %v571_v33 = vmul.f32 %v3634_v13, %v3772_v51  ;;  %v886_v49 = vmul.f32 %v3645_v18, %v503_v41  ;;  %v1701_v19 = vadd.f32 %v1590_v54, %v1424_v52  ;;  %v1920_v8 = vsel %vm710_vm0, %v1918_v0, %v1919_v56 }
  0x84   : > { %v1801_v50 = vadd.f32 %v3689_v37, %v1700_v44  ;;  %v3894_v1 = vmul.f32 %v3645_v18, %v507_v53  ;;  %v2180_v55 = vrot.slane %v2068_v5, 2  ;;  %v3897_v3 = vmul.f32 %v3645_v18, %v511_v36 }
  0x85   : > { %v833_v27 = vadd.f32 %v736_v9, %v571_v33  ;;  %v1000_v10 = vrot.slane %v886_v49, 2  ;;  %v1802_v45 = vadd.f32 %v1754_v59, %v1701_v19  ;;  %v1164_v54 = vmul.f32 %v3651_v21, %v3788_v4 }
  0x86   : > { %v2014_v51 = vadd.f32 %v1918_v0, %v1801_v50  ;;  %v1005_v41 = vrot.slane %v3894_v1, 2  ;;  %v2181_v58 = vsel %vm956_vm1, %v2179_v48, %v2180_v55  ;;  %v1478_v5 = vmul.f32 %v3655_v23, %v507_v53 }
  0x87   : > { %v1001_v52 = vsel %vm956_vm1, %v998_v57, %v1000_v10  ;;  %v2015_v9 = vadd.f32 %v1920_v8, %v1802_v45  ;;  %v3907_v49 = vmul.f32 %v3655_v23, %v511_v36  ;;  %v1755_v59 = vmul.f32 %v3670_v28, %v3803_v61 }
  0x88   : > { %v2291_v33 = vadd.f32 %v2179_v48, %v2014_v51  ;;  %v1111_v39 = vadd.f32 %v1001_v52, %v833_v27  ;;  %v1591_v50 = vrot.slane %v1478_v5, 2  ;;  %v2069_v0 = vmul.f32 %v3704_v46, %v511_v36 }
  0x89   : > { %v648_v19 = vmul.f32 %v3643_v17, %v3630_v11  ;;  %v2292_v57 = vadd.f32 %v2181_v58, %v2015_v9  ;;  %v649_v27 = vmul.f32 %v3643_v17, %v3632_v12  ;;  %v3921_v45 = vmul.f32 %v3643_v17, %v3818_v60 }
  0x8a   : > { %v2346_v10 = vadd.f32 %v3798_v32, %v2291_v33  ;;  %v1212_v44 = vadd.f32 %v1164_v54, %v1111_v39  ;;  %v1592_v48 = vsel %vm956_vm1, %v1589_v40, %v1591_v50  ;;  %v2182_v8 = vrot.slane %v2069_v0, 2 }
  0x8b   : > { %v2347_v36 = vadd.f32 %v3798_v32, %v2292_v57  ;;  %v714_v58 = vrot.slane %v648_v19, 1  ;;  %v715_v39 = vrot.slane %v649_v27, 1  ;;  %v5340_v54 = vrot.slane %v3921_v45, 1 }
  0x8c   : > { %v2459_v51 = vrot.slane %v2346_v10, 7  ;;  %v1425_v52 = vadd.f32 %v1328_v20, %v1212_v44  ;;  %v2183_v5 = vsel %vm956_vm1, %v2180_v55, %v2182_v8  ;;  %v863_v40 = vmul.f32 %v3645_v18, %v3630_v11 }
  0x8d   : > { %v2460_v9 = vrot.slane %v2347_v36, 7  ;;  %v810_v50 = vadd.f32 %v714_v58, %v3641_v16  ;;  %v864_v0 = vmul.f32 %v3645_v18, %v3632_v12  ;;  %v716_v57 = vsel %vm710_vm0, %v714_v58, %v715_v39 }
  0x8e   : > { %v1702_v33 = vadd.f32 %v1592_v48, %v1425_v52  ;;  %v3935_v20 = vadd.f32 %v5340_v54, %v3641_v16  ;;  %v962_v55 = vrot.slane %v863_v40, 2  ;;  %v1142_v44 = vmul.f32 %v3651_v21, %v3636_v14 }
  0x8f   : > { %v2461_v11 = vsel %vm2418_vm2, %v2459_v51, %v2460_v9  ;;  %v811_v10 = vadd.f32 %v716_v57, %v3659_v24  ;;  %v963_v48 = vrot.slane %v864_v0, 2  ;;  %v1241_v27 = vmul.f32 %v3653_v22, %v3636_v14 }
  0x90   : > { %v1803_v19 = vadd.f32 %v1755_v59, %v1702_v33  ;;  %3124 = vmatprep.mubr.f32.mxu1 %v2461_v11  ;;  %v1088_v8 = vadd.f32 %v962_v55, %v810_v50  ;;  %v3945_v36 = vmul.f32 %v3653_v22, %v3638_v15  ;;  %v1455_v52 = vmul.f32 %v3655_v23, %v3636_v14 }
  0x91   : > { %v964_v59 = vsel %vm956_vm1, %v962_v55, %v963_v48  ;;  %v1456_v24 = vmul.f32 %v3655_v23, %v3638_v15  ;;  %v1733_v51 = vmul.f32 %v3670_v28, %v3818_v60  ;;  %v1306_v50 = vrot.slane %v1241_v27, 1 }
  0x92   : > { %v2016_v58 = vadd.f32 %v1919_v56, %v1803_v19  ;;  %v1089_v40 = vadd.f32 %v964_v59, %v811_v10  ;;  %v1189_v33 = vadd.f32 %v3666_v26, %v1088_v8  ;;  %v1307_v0 = vrot.slane %v3945_v36, 1  ;;  %v483_v10 = vld [vmem:[#allocation2 + $0xb8] sm:$0x1] }
  0x93   : > { %v1553_v11 = vrot.slane %v1455_v52, 2  ;;  %v1554_v54 = vrot.slane %v1456_v24, 2  ;;  %v1832_v29 = vmul.f32 %v3691_v38, %v3818_v60  ;;  %v3963_v34 = vmul.f32 %v3691_v38, %v3824_v62 }
  0x94   : > { %v2293_v57 = vadd.f32 %v2183_v5, %v2016_v58  ;;  %v1190_v56 = vadd.f32 %v1142_v44, %v1089_v40  ;;  %v1308_v55 = vsel %vm710_vm0, %v1306_v50, %v1307_v0  ;;  %v1402_v19 = vadd.f32 %v1306_v50, %v1189_v33 }
  0x95   : > { %v1555_v27 = vsel %vm956_vm1, %v1553_v11, %v1554_v54  ;;  %v1897_v36 = vrot.slane %v1832_v29, 1  ;;  %v2046_v5 = vmul.f32 %v3704_v46, %v3818_v60  ;;  %v1898_v44 = vrot.slane %v3963_v34, 1 }
  0x96   : > { %v2348_v8 = vadd.f32 %v3798_v32, %v2293_v57  ;;  %v1403_v52 = vadd.f32 %v1308_v55, %v1190_v56  ;;  %v1679_v58 = vadd.f32 %v1553_v11, %v1402_v19  ;;  %v2047_v59 = vmul.f32 %v3704_v46, %v3824_v62 }
  0x97   : > { %v2144_v40 = vrot.slane %v2046_v5, 2  ;;  %v550_v33 = vmul.f32 %v3634_v13, %v3632_v12  ;;  %v3975_v50 = vmul.f32 %v3645_v18, %v483_v10  ;;  %v1899_v56 = vsel %vm710_vm0, %v1897_v36, %v1898_v44  ;;  %v319_v12 = vld [vmem:[%s3616_s18 + $0xa0] sm:$0xff] }
  0x98   : > { %v2462_v24 = vrot.slane %v2348_v8, 7  ;;  %v1680_v57 = vadd.f32 %v1555_v27, %v1403_v52  ;;  %v1780_v29 = vadd.f32 %v3689_v37, %v1679_v58  ;;  %v2145_v11 = vrot.slane %v2047_v59, 2  ;;  %v320_v58 = vld [vmem:[%s3616_s18 + $0xa8] sm:$0xff] }
  0x99   : > { %v812_v55 = vadd.f32 %v715_v39, %v550_v33  ;;  %v966_v19 = vsel %vm956_vm1, %v963_v48, %v965_v35  ;;  %v1143_v52 = vmul.f32 %v3651_v21, %v3638_v15  ;;  %v1557_v6 = vsel %vm956_vm1, %v1554_v54, %v1556_v30 }
  0x9a   : > { %v2463_v34 = vsel %vm2418_vm2, %v2460_v9, %v2462_v24  ;;  %v1781_v5 = vadd.f32 %v1733_v51, %v1680_v57  ;;  %v1993_v53 = vadd.f32 %v1897_v36, %v1780_v29  ;;  %v2146_v27 = vsel %vm956_vm1, %v2144_v40, %v2145_v11 }
  0x9b   : > { %3125 = vmatmul.mubr.f32.vlgmr.msra.gmra.mxu1 %v2463_v34  ;;  %v1090_v59 = vadd.f32 %v966_v19, %v812_v55  ;;  %v3990_v9 = vmul.f32 %v3655_v23, %v483_v10  ;;  %v1734_v35 = vmul.f32 %v3670_v28, %v3824_v62  ;;  %v2048_v51 = vmul.f32 %v3704_v46, %v483_v10 }
  0x9c   : > { %v1994_v39 = vadd.f32 %v1899_v56, %v1781_v5  ;;  %v2270_v48 = vadd.f32 %v2144_v40, %v1993_v53  ;;  %v3998_v36 = vmax.f32 %v319_v12, 0.0  ;;  %v4001_v57 = vmax.f32 %v320_v58, 0.0 }
  0x9d   : > { %v1191_v24 = vadd.f32 %v1143_v52, %v1090_v59  ;;  %v573_v29 = vmul.f32 %v3634_v13, %v3779_v2  ;;  %v2147_v54 = vrot.slane %v2048_v51, 2  ;;  %v664_v56 = vmul.f32 %v3643_v17, %v3779_v2 }
  0x9e   : > { %v2271_v31 = vadd.f32 %v2146_v27, %v1994_v39  ;;  %v2325_v30 = vadd.f32 %v3798_v32, %v2270_v48  ;;  %v4010_v10 = vmul.f32 %v3643_v17, %v3788_v4  ;;  %v4014_v40 = vmul.f32 %v3643_v17, %v3998_v36 }
  0x9f   : > { %v1404_v53 = vadd.f32 %v1307_v0, %v1191_v24  ;;  %v887_v34 = vmul.f32 %v3645_v18, %v3779_v2  ;;  %v2148_v12 = vsel %vm956_vm1, %v2145_v11, %v2147_v54  ;;  %v738_v5 = vrot.slane %v664_v56, 1 }
  0xa0   : > { %v2326_v55 = vadd.f32 %v3798_v32, %v2271_v31  ;;  %v2424_v19 = vrot.slane %v2325_v30, 7  ;;  %v739_v0 = vrot.slane %v4010_v10, 1  ;;  %v5342_v52 = vrot.slane %v4014_v40, 1 }
  0xa1   : > { %v1681_v27 = vadd.f32 %v1557_v6, %v1404_v53  ;;  %v888_v58 = vmul.f32 %v3645_v18, %v3788_v4  ;;  %v834_v39 = vadd.f32 %v738_v5, %v3641_v16  ;;  %v1002_v48 = vrot.slane %v887_v34, 2 }
  0xa2   : > { %v2425_v59 = vrot.slane %v2326_v55, 7  ;;  %v1166_v2 = vmul.f32 %v3651_v21, %v3801_v42  ;;  %v740_v24 = vsel %vm710_vm0, %v738_v5, %v739_v0  ;;  %v4031_v11 = vadd.f32 %v5342_v52, %v3641_v16 }
  0xa3   : > { %v1782_v51 = vadd.f32 %v1734_v35, %v1681_v27  ;;  %v1003_v6 = vrot.slane %v888_v58, 2  ;;  %v835_v30 = vadd.f32 %v740_v24, %v573_v29  ;;  %v1112_v54 = vadd.f32 %v1002_v48, %v834_v39 }
  0xa4   : > { %v2426_v31 = vsel %vm2418_vm2, %v2424_v19, %v2425_v59  ;;  %v1257_v56 = vmul.f32 %v3653_v22, %v3801_v42  ;;  %v4039_v35 = vmul.f32 %v3653_v22, %v3803_v61  ;;  %v1479_v34 = vmul.f32 %v3655_v23, %v3801_v42 }
  0xa5   : > { %3103 = vmatprep.mubr.f32.mxu0 %v2426_v31  ;;  %v1995_v53 = vadd.f32 %v1898_v44, %v1782_v51  ;;  %v1004_v10 = vsel %vm956_vm1, %v1002_v48, %v1003_v6  ;;  %v1213_v5 = vadd.f32 %v3666_v26, %v1112_v54  ;;  %v1480_v29 = vmul.f32 %v3655_v23, %v3803_v61 }
  0xa6   : > { %v1113_v55 = vadd.f32 %v1004_v10, %v835_v30  ;;  %v1330_v19 = vrot.slane %v1257_v56, 1  ;;  %v1331_v58 = vrot.slane %v4039_v35, 1  ;;  %v1593_v44 = vrot.slane %v1479_v34, 2 }
  0xa7   : > { %v2272_v27 = vadd.f32 %v2148_v12, %v1995_v53  ;;  %v1757_v39 = vmul.f32 %v3670_v28, %v3998_v36  ;;  %v1594_v24 = vrot.slane %v1480_v29, 2  ;;  %v1848_v31 = vmul.f32 %v3691_v38, %v3998_v36  ;;  %v515_v53 = vld [vmem:[#allocation2 + $0x1b0] sm:$0x1] }
  0xa8   : > { %v1214_v48 = vadd.f32 %v1166_v2, %v1113_v55  ;;  %v1426_v51 = vadd.f32 %v1330_v19, %v1213_v5  ;;  %v1332_v54 = vsel %vm710_vm0, %v1330_v19, %v1331_v58  ;;  %v4055_v56 = vmul.f32 %v3691_v38, %v4001_v57 }
  0xa9   : > { %v2327_v30 = vadd.f32 %v3798_v32, %v2272_v27  ;;  %v2070_v12 = vmul.f32 %v3704_v46, %v3998_v36  ;;  %v1595_v2 = vsel %vm956_vm1, %v1593_v44, %v1594_v24  ;;  %v1921_v34 = vrot.slane %v1848_v31, 1 }
  0xaa   : > { %v1427_v10 = vadd.f32 %v1332_v54, %v1214_v48  ;;  %v1703_v35 = vadd.f32 %v1593_v44, %v1426_v51  ;;  %v1922_v5 = vrot.slane %v4055_v56, 1  ;;  %v2071_v19 = vmul.f32 %v3704_v46, %v4001_v57 }
  0xab   : > { %v2427_v55 = vrot.slane %v2327_v30, 7  ;;  %v2184_v29 = vrot.slane %v2070_v12, 2  ;;  %v574_v8 = vmul.f32 %v3634_v13, %v3788_v4  ;;  %v4067_v48 = vmul.f32 %v3645_v18, %v515_v53 }
  0xac   : > { %v1704_v27 = vadd.f32 %v1595_v2, %v1427_v10  ;;  %v1804_v52 = vadd.f32 %v3689_v37, %v1703_v35  ;;  %v1923_v51 = vsel %vm710_vm0, %v1921_v34, %v1922_v5  ;;  %v2185_v31 = vrot.slane %v2071_v19, 2  ;;  %v305_v2 = vld [vmem:[%s3616_s18 + $0x30] sm:$0xff]  ;;  %v306_v35 = vld [vmem:[%s3616_s18 + $0x38] sm:$0xff] }
  0xad   : > { %v2428_v44 = vsel %vm2418_vm2, %v2425_v59, %v2427_v55  ;;  %v1006_v30 = vsel %vm956_vm1, %v1003_v6, %v1005_v41  ;;  %v836_v10 = vadd.f32 %v739_v0, %v574_v8  ;;  %v1167_v59 = vmul.f32 %v3651_v21, %v3803_v61 }
  0xae   : > { %3104 = vmatmul.mubr.f32.gmra.mxu0 %v2428_v44  ;;  %v1805_v54 = vadd.f32 %v1757_v39, %v1704_v27  ;;  %v2017_v12 = vadd.f32 %v1921_v34, %v1804_v52  ;;  %v2186_v33 = vsel %vm956_vm1, %v2184_v29, %v2185_v31  ;;  %v4083_v55 = vmul.f32 %v3655_v23, %v515_v53 }
  0xaf   : > { %v5365_v1 = vrot.slane %v3907_v49, 2  ;;  %v1114_v52 = vadd.f32 %v1006_v30, %v836_v10  ;;  %v1758_v8 = vmul.f32 %v3670_v28, %v4001_v57  ;;  %v2072_v34 = vmul.f32 %v3704_v46, %v515_v53 }
  0xb0   : > { %v2018_v6 = vadd.f32 %v1923_v51, %v1805_v54  ;;  %v2294_v39 = vadd.f32 %v2184_v29, %v2017_v12  ;;  %v4092_v19 = vmax.f32 %v305_v2, 0.0  ;;  %v4094_v27 = vmax.f32 %v306_v35, 0.0 }
  0xb1   : > { %v1597_v41 = vsel %vm956_vm1, %v1594_v24, %v5365_v1  ;;  %v1215_v49 = vadd.f32 %v1167_v59, %v1114_v52  ;;  %v552_v24 = vmul.f32 %v3634_v13, %v3636_v14  ;;  %v2187_v29 = vrot.slane %v2072_v34, 2 }
  0xb2   : > { %v2295_v44 = vadd.f32 %v2186_v33, %v2018_v6  ;;  %v2349_v4 = vadd.f32 %v3798_v32, %v2294_v39  ;;  %v651_v51 = vmul.f32 %v3643_v17, %v3638_v15  ;;  %v4103_v30 = vmul.f32 %v3643_v17, %v4092_v19 }
  0xb3   : > { %v866_v53 = vmul.f32 %v3645_v18, %v3636_v14  ;;  %v1428_v12 = vadd.f32 %v1331_v58, %v1215_v49  ;;  %v867_v10 = vmul.f32 %v3645_v18, %v3638_v15  ;;  %v2188_v2 = vsel %vm956_vm1, %v2185_v31, %v2187_v29 }
  0xb4   : > { %v2350_v54 = vadd.f32 %v3798_v32, %v2295_v44  ;;  %v2464_v33 = vrot.slane %v2349_v4, 7  ;;  %v718_v35 = vrot.slane %v651_v51, 1  ;;  %v5344_v59 = vrot.slane %v4103_v30, 1 }
  0xb5   : > { %v967_v1 = vrot.slane %v866_v53, 2  ;;  %v1705_v39 = vadd.f32 %v1597_v41, %v1428_v12  ;;  %v968_v17 = vrot.slane %v867_v10, 2  ;;  %v1145_v52 = vmul.f32 %v3651_v21, %v3818_v60 }
  0xb6   : > { %v2465_v6 = vrot.slane %v2350_v54, 7  ;;  %v5366_v14 = vrot.slane %v3663_v25, 1  ;;  %v4120_v58 = vadd.f32 %v5344_v59, %v3641_v16  ;;  %v1243_v34 = vmul.f32 %v3653_v22, %v3818_v60 }
  0xb7   : > { %v1091_v31 = vadd.f32 %v967_v1, %v3700_v43  ;;  %v1806_v44 = vadd.f32 %v1758_v8, %v1705_v39  ;;  %v969_v29 = vsel %vm956_vm1, %v967_v1, %v968_v17  ;;  %v1244_v51 = vmul.f32 %v3653_v22, %v3824_v62 }
  0xb8   : > { %v719_v4 = vsel %vm710_vm0, %v5366_v14, %v718_v35  ;;  %v2466_v41 = vsel %vm2418_vm2, %v2464_v33, %v2465_v6  ;;  %v1309_v53 = vrot.slane %v1243_v34, 1  ;;  %v1458_v54 = vmul.f32 %v3655_v23, %v3818_v60 }
  0xb9   : > { %v814_v49 = vadd.f32 %v719_v4, %v552_v24  ;;  %3127 = vmatprep.mubr.f32.mxu1 %v2466_v41  ;;  %v1192_v25 = vadd.f32 %v3666_v26, %v1091_v31  ;;  %v2019_v43 = vadd.f32 %v1922_v5, %v1806_v44  ;;  %v1459_v8 = vmul.f32 %v3655_v23, %v3824_v62  ;;  %v487_v44 = vld [vmem:[#allocation2 + $0x1c0] sm:$0x1] }
  0xba   : > { %v1736_v24 = vmul.f32 %v3670_v28, %v4092_v19  ;;  %v1310_v33 = vrot.slane %v1244_v51, 1  ;;  %v1558_v1 = vrot.slane %v1458_v54, 2  ;;  %v1834_v22 = vmul.f32 %v3691_v38, %v4092_v19 }
  0xbb   : > { %v1092_v12 = vadd.f32 %v969_v29, %v814_v49  ;;  %v1405_v10 = vadd.f32 %v1309_v53, %v1192_v25  ;;  %v2296_v39 = vadd.f32 %v2188_v2, %v2019_v43  ;;  %v1559_v4 = vrot.slane %v1459_v8, 2 }
  0xbc   : > { %v4142_v56 = vmul.f32 %v3691_v38, %v4094_v27  ;;  %v1311_v5 = vsel %vm710_vm0, %v1309_v53, %v1310_v33  ;;  %v1900_v34 = vrot.slane %v1834_v22, 1  ;;  %v2049_v41 = vmul.f32 %v3704_v46, %v4092_v19 }
  0xbd   : > { %v1193_v14 = vadd.f32 %v1145_v52, %v1092_v12  ;;  %v1682_v31 = vadd.f32 %v1558_v1, %v1405_v10  ;;  %v2351_v49 = vadd.f32 %v3798_v32, %v2296_v39  ;;  %v1560_v25 = vsel %vm956_vm1, %v1558_v1, %v1559_v4 }
  0xbe   : > { %v1901_v2 = vrot.slane %v4142_v56, 1  ;;  %v2050_v38 = vmul.f32 %v3704_v46, %v4094_v27  ;;  %v2149_v51 = vrot.slane %v2049_v41, 2  ;;  %v553_v53 = vmul.f32 %v3634_v13, %v3638_v15 }
  0xbf   : > { %v1406_v29 = vadd.f32 %v1311_v5, %v1193_v14  ;;  %v1783_v52 = vadd.f32 %v3689_v37, %v1682_v31  ;;  %v2467_v54 = vrot.slane %v2351_v49, 7  ;;  %v4159_v8 = vmul.f32 %v3645_v18, %v487_v44  ;;  %v321_v31 = vld [vmem:[%s3616_s18 + $0xb0] sm:$0xff] }
  0xc0   : > { %v1902_v12 = vsel %vm710_vm0, %v1900_v34, %v1901_v2  ;;  %v2150_v37 = vrot.slane %v2050_v38, 2  ;;  %v815_v1 = vadd.f32 %v718_v35, %v553_v53  ;;  %v5367_v22 = vrot.slane %v3751_v7, 2  ;;  %v322_v7 = vld [vmem:[%s3616_s18 + $0xb8] sm:$0xff] }
  0xc1   : > { %v1683_v43 = vadd.f32 %v1560_v25, %v1406_v29  ;;  %v1996_v10 = vadd.f32 %v1900_v34, %v1783_v52  ;;  %v2468_v14 = vsel %vm2418_vm2, %v2465_v6, %v2467_v54  ;;  %v1146_v5 = vmul.f32 %v3651_v21, %v3824_v62  ;;  %v4186_v54 = vld [vmem:[#allocation6] ss:$0 sm:$0xff] }
  0xc2   : > { %v971_v39 = vsel %vm956_vm1, %v968_v17, %v5367_v22  ;;  %3128 = vmatmul.mubr.f32.gmra.mxu1 %v2468_v14  ;;  %v2151_v18 = vsel %vm956_vm1, %v2149_v51, %v2150_v37  ;;  %v4171_v35 = vmul.f32 %v3655_v23, %v487_v44  ;;  %v5368_v17 = vrot.slane %v3990_v9, 2 }
  0xc3   : > { %v1784_v13 = vadd.f32 %v1736_v24, %v1683_v43  ;;  %v2273_v41 = vadd.f32 %v2149_v51, %v1996_v10  ;;  %v1093_v34 = vadd.f32 %v971_v39, %v815_v1  ;;  %v1737_v24 = vmul.f32 %v3670_v28, %v4094_v27  ;;  %v4190_v43 = vld [vmem:[#allocation6 + $0x1] ss:$0 sm:$0xff]  ;;  %v4204_v1 = vld [vmem:[#allocation6 + $0x2] ss:$0 sm:$0xff] }
  0xc4   : > { %v1562_v6 = vsel %vm956_vm1, %v1559_v4, %v5368_v17  ;;  %v2051_v21 = vmul.f32 %v3704_v46, %v487_v44  ;;  %v4182_v38 = vmax.f32 %v321_v31, 0.0  ;;  %v4184_v53 = vmax.f32 %v322_v7, 0.0 }
  0xc5   : > { %v1997_v49 = vadd.f32 %v1902_v12, %v1784_v13  ;;  %v2328_v29 = vadd.f32 %v3798_v32, %v2273_v41  ;;  %v1194_v25 = vadd.f32 %v1146_v5, %v1093_v34  ;;  %v576_v9 = vmul.f32 %v4186_v54, %v3801_v42  ;;  %v4214_v5 = vld [vmem:[#allocation6 + $0x3] ss:$0 sm:$0xff] }
  0xc6   : > { %v2152_v51 = vrot.slane %v2051_v21, 2  ;;  %v4194_v46 = vmul.f32 %v4190_v43, %v3803_v61  ;;  %v4198_v44 = vmul.f32 %v4190_v43, %v4182_v38  ;;  %v4210_v22 = vmul.f32 %v4204_v1, %v3803_v61  ;;  %v4236_v21 = vld [vmem:[#allocation6 + $0x4] ss:$0 sm:$0xff] }
  0xc7   : > { %v2274_v23 = vadd.f32 %v2151_v18, %v1997_v49  ;;  %v2429_v4 = vrot.slane %v2328_v29, 7  ;;  %v1407_v28 = vadd.f32 %v1310_v33, %v1194_v25  ;;  %v890_v33 = vmul.f32 %v4204_v1, %v3801_v42  ;;  %v4220_v42 = vld [vmem:[#allocation2 + $0xc8] sm:$0xff] }
  0xc8   : > { %v2153_v10 = vsel %vm956_vm1, %v2150_v37, %v2152_v51  ;;  %v5345_v14 = vrot.slane %v4194_v46, 1  ;;  %v5343_v13 = vrot.slane %v4198_v44, 1  ;;  %v1169_v31 = vmul.f32 %v4214_v5, %v3998_v36  ;;  %5369 = vst [vmem:[#allocation13_spill] sm:$0xff] %v4220_v42 }
  0xc9   : > { %v4201_v12 = vadd.f32 %v3798_v32, %v2274_v23  ;;  %v1684_v39 = vadd.f32 %v1562_v6, %v1407_v28  ;;  %v1007_v18 = vrot.slane %v890_v33, 2  ;;  %v1008_v41 = vrot.slane %v4210_v22, 2  ;;  %v4249_v33 = vld [vmem:[#allocation6 + $0x5] ss:$0 sm:$0xff] }
  0xca   : > { %v4224_v34 = vmul.f32 %v4220_v42, %v4214_v5  ;;  %v5370_v49 = vrot.slane %v3833_v63, 1  ;;  %v4234_v6 = vadd.f32 %v5343_v13, %v3641_v16  ;;  %v1259_v29 = vmul.f32 %v4236_v21, %v3998_v36 }
  0xcb   : > { %v2430_v37 = vrot.slane %v4201_v12, 7  ;;  %v1785_v7 = vadd.f32 %v1737_v24, %v1684_v39  ;;  %v1009_v24 = vsel %vm956_vm1, %v1007_v18, %v1008_v41  ;;  %v1115_v51 = vadd.f32 %v1007_v18, %v3854_v47  ;;  %v4256_v39 = vld [vmem:[#allocation6 + $0x6] ss:$0 sm:$0xff] }
  0xcc   : > { %v743_v17 = vsel %vm710_vm0, %v5370_v49, %v5345_v14  ;;  %5371 = vst [vmem:[#allocation14_spill] sm:$0xff] %v4234_v6  ;;  %v4247_v28 = vmul.f32 %v4236_v21, %v4001_v57  ;;  %v1333_v12 = vrot.slane %v1259_v29, 1  ;;  %v1482_v22 = vmul.f32 %v4249_v33, %v3998_v36  ;;  %v308_v6 = vld [vmem:[%s3616_s18 + $0x48] sm:$0xff] }
  0xcd   : > { %v2431_v25 = vsel %vm2418_vm2, %v2429_v4, %v2430_v37  ;;  %v838_v23 = vadd.f32 %v743_v17, %v576_v9  ;;  %v1998_v63 = vadd.f32 %v1901_v2, %v1785_v7  ;;  %v1216_v9 = vadd.f32 %v3666_v26, %v1115_v51 }
  0xce   : > { %3106 = vmatprep.mubr.f32.mxu0 %v2431_v25  ;;  %v1483_v47 = vmul.f32 %v4249_v33, %v4001_v57  ;;  %v4260_v56 = vmul.f32 %v4256_v39, %v4220_v42  ;;  %v1334_v18 = vrot.slane %v4247_v28, 1  ;;  %v1598_v7 = vrot.slane %v1482_v22, 2  ;;  %v519_v28 = vld [vmem:[#allocation2 + $0x230] sm:$0x1]  ;;  %v307_v42 = vld [vmem:[%s3616_s18 + $0x40] sm:$0xff] }
  0xcf   : > { %v1116_v4 = vadd.f32 %v1009_v24, %v838_v23  ;;  %v2275_v2 = vadd.f32 %v2153_v10, %v1998_v63  ;;  %v1760_v49 = vmul.f32 %v4256_v39, %v4182_v38  ;;  %v1429_v29 = vadd.f32 %v1333_v12, %v1216_v9  ;;  %v4265_v23 = vld [vmem:[#allocation6 + $0x7] ss:$0 sm:$0xff]  ;;  %v4275_v63 = vld [vmem:[#allocation6 + $0x8] ss:$0 sm:$0xff] }
  0xd0   : > { %v1599_v25 = vrot.slane %v1483_v47, 2  ;;  %v1850_v24 = vmul.f32 %v4265_v23, %v4182_v38  ;;  %v1335_v13 = vsel %vm710_vm0, %v1333_v12, %v1334_v18  ;;  %v4273_v10 = vmul.f32 %v4265_v23, %v4184_v53 }
  0xd1   : > { %v1217_v17 = vadd.f32 %v1169_v31, %v1116_v4  ;;  %v2330_v51 = vadd.f32 %v3798_v32, %v2275_v2  ;;  %v2073_v31 = vmul.f32 %v4275_v63, %v4182_v38  ;;  %v1706_v9 = vadd.f32 %v1598_v7, %v1429_v29 }
  0xd2   : > { %v1600_v4 = vsel %vm956_vm1, %v1598_v7, %v1599_v25  ;;  %v1924_v47 = vrot.slane %v1850_v24, 1  ;;  %v1925_v2 = vrot.slane %v4273_v10, 1  ;;  %v2074_v12 = vmul.f32 %v4275_v63, %v4184_v53 }
  0xd3   : > { %v1430_v22 = vadd.f32 %v1335_v13, %v1217_v17  ;;  %v2432_v15 = vrot.slane %v2330_v51, 7  ;;  %v2189_v59 = vrot.slane %v2073_v31, 2  ;;  %v1807_v0 = vadd.f32 %v4260_v56, %v1706_v9 }
  0xd4   : > { %v577_v14 = vmul.f32 %v4186_v54, %v3803_v61  ;;  %v4287_v13 = vmul.f32 %v4204_v1, %v519_v28  ;;  %v1926_v17 = vsel %vm710_vm0, %v1924_v47, %v1925_v2  ;;  %v2190_v29 = vrot.slane %v2074_v12, 2 }
  0xd5   : > { %v1707_v52 = vadd.f32 %v1600_v4, %v1430_v22  ;;  %v2433_v7 = vsel %vm2418_vm2, %v2430_v37, %v2432_v15  ;;  %v5372_v24 = vrot.slane %v3897_v3, 2  ;;  %v2020_v22 = vadd.f32 %v1924_v47, %v1807_v0 }
  0xd6   : > { %3107 = vmatmul.mubr.f32.gmra.mxu0 %v2433_v7  ;;  %v5373_v4 = vrot.slane %v4194_v46, 1  ;;  %v2191_v15 = vsel %vm956_vm1, %v2189_v59, %v2190_v29  ;;  %v1170_v37 = vmul.f32 %v4214_v5, %v4001_v57  ;;  %v4305_v12 = vmul.f32 %v4249_v33, %v519_v28 }
  0xd7   : > { %v1011_v51 = vsel %vm956_vm1, %v1008_v41, %v5372_v24  ;;  %v1808_v31 = vadd.f32 %v1760_v49, %v1707_v52  ;;  %v5374_v3 = vrot.slane %v4083_v55, 2  ;;  %v2297_v41 = vadd.f32 %v2189_v59, %v2020_v22 }
  0xd8   : > { %v839_v61 = vadd.f32 %v5373_v4, %v577_v14  ;;  %v1761_v14 = vmul.f32 %v4256_v39, %v4184_v53  ;;  %v1606_v49 = vrot.slane %v4305_v12, 2  ;;  %v2075_v47 = vmul.f32 %v4275_v63, %v519_v28 }
  0xd9   : > { %v1602_v52 = vsel %vm956_vm1, %v1599_v25, %v5374_v3  ;;  %v2021_v0 = vadd.f32 %v1926_v17, %v1808_v31  ;;  %v4314_v7 = vmax.f32 %v307_v42, 0.0  ;;  %v4316_v24 = vmax.f32 %v308_v6, 0.0 }
  0xda   : > { %v1117_v46 = vadd.f32 %v1011_v51, %v839_v61  ;;  %v2352_v9 = vadd.f32 %v3798_v32, %v2297_v41  ;;  %v555_v25 = vmul.f32 %v4186_v54, %v3818_v60  ;;  %v2192_v59 = vrot.slane %v2075_v47, 2 }
  0xdb   : > { %v2298_v4 = vadd.f32 %v2191_v15, %v2021_v0  ;;  %v653_v17 = vmul.f32 %v4190_v43, %v3824_v62  ;;  %v4325_v51 = vmul.f32 %v4190_v43, %v4314_v7  ;;  %v869_v42 = vmul.f32 %v4204_v1, %v3818_v60 }
  0xdc   : > { %v1218_v55 = vadd.f32 %v1170_v37, %v1117_v46  ;;  %v2469_v28 = vrot.slane %v2352_v9, 7  ;;  %v870_v22 = vmul.f32 %v4204_v1, %v3824_v62  ;;  %v2193_v61 = vsel %vm956_vm1, %v2190_v29, %v2192_v59 }
  0xdd   : > { %v2353_v6 = vadd.f32 %v3798_v32, %v2298_v4  ;;  %v721_v15 = vrot.slane %v653_v17, 1  ;;  %v5347_v37 = vrot.slane %v4325_v51, 1  ;;  %v972_v3 = vrot.slane %v869_v42, 2 }
  0xde   : > { %v1431_v31 = vadd.f32 %v1334_v18, %v1218_v55  ;;  %v973_v46 = vrot.slane %v870_v22, 2  ;;  %v1148_v47 = vmul.f32 %v4214_v5, %v4092_v19  ;;  %v5375_v60 = vrot.slane %v3921_v45, 1 }
  0xdf   : > { %v2470_v0 = vrot.slane %v2353_v6, 7  ;;  %v4342_v18 = vadd.f32 %v5347_v37, %v3641_v16  ;;  %v1094_v29 = vadd.f32 %v972_v3, %v3935_v20  ;;  %v1245_v9 = vmul.f32 %v4236_v21, %v4092_v19 }
  0xe0   : > { %v1708_v41 = vadd.f32 %v1602_v52, %v1431_v31  ;;  %v722_v32 = vsel %vm710_vm0, %v5375_v60, %v721_v15  ;;  %v974_v59 = vsel %vm956_vm1, %v972_v3, %v973_v46  ;;  %v1246_v17 = vmul.f32 %v4236_v21, %v4094_v27 }
  0xe1   : > { %v2471_v52 = vsel %vm2418_vm2, %v2469_v28, %v2470_v0  ;;  %v817_v55 = vadd.f32 %v722_v32, %v555_v25  ;;  %v1195_v45 = vadd.f32 %v3666_v26, %v1094_v29  ;;  %v1312_v42 = vrot.slane %v1245_v9, 1 }
  0xe2   : > { %v1809_v4 = vadd.f32 %v1761_v14, %v1708_v41  ;;  %3130 = vmatprep.mubr.f32.mxu1 %v2471_v52  ;;  %v1461_v6 = vmul.f32 %v4249_v33, %v4092_v19  ;;  %v1462_v14 = vmul.f32 %v4249_v33, %v4094_v27  ;;  %v1739_v25 = vmul.f32 %v4256_v39, %v4314_v7 }
  0xe3   : > { %v1095_v31 = vadd.f32 %v974_v59, %v817_v55  ;;  %v1313_v28 = vrot.slane %v1246_v17, 1  ;;  %v1408_v22 = vadd.f32 %v1312_v42, %v1195_v45  ;;  %v1836_v3 = vmul.f32 %v4265_v23, %v4314_v7  ;;  %v4372_v55 = vld [vmem:[%s5328_s2] ss:$0 sm:$0xff] }
  0xe4   : > { %v2022_v20 = vadd.f32 %v1925_v2, %v1809_v4  ;;  %v1563_v26 = vrot.slane %v1461_v6, 2  ;;  %v1564_v32 = vrot.slane %v1462_v14, 2  ;;  %v4364_v10 = vmul.f32 %v4265_v23, %v4316_v24  ;;  %v491_v4 = vld [vmem:[#allocation2 + $0x1b8] sm:$0x1] }
  0xe5   : > { %v1196_v60 = vadd.f32 %v1148_v47, %v1095_v31  ;;  %v1314_v2 = vsel %vm710_vm0, %v1312_v42, %v1313_v28  ;;  %v1903_v9 = vrot.slane %v1836_v3, 1  ;;  %v2052_v52 = vmul.f32 %v4275_v63, %v4314_v7 }
  0xe6   : > { %v2299_v41 = vadd.f32 %v2193_v61, %v2022_v20  ;;  %v1685_v29 = vadd.f32 %v1563_v26, %v1408_v22  ;;  %v1565_v59 = vsel %vm956_vm1, %v1563_v26, %v1564_v32  ;;  %v1904_v45 = vrot.slane %v4364_v10, 1 }
  0xe7   : > { %v1409_v47 = vadd.f32 %v1314_v2, %v1196_v60  ;;  %v2053_v42 = vmul.f32 %v4275_v63, %v4316_v24  ;;  %v2154_v6 = vrot.slane %v2052_v52, 2  ;;  %v556_v20 = vmul.f32 %v4186_v54, %v3824_v62 }
  0xe8   : > { %v2354_v61 = vadd.f32 %v4372_v55, %v2299_v41  ;;  %v1786_v17 = vadd.f32 %v4260_v56, %v1685_v29  ;;  %v1905_v22 = vsel %vm710_vm0, %v1903_v9, %v1904_v45  ;;  %v4384_v3 = vmul.f32 %v4204_v1, %v491_v4 }
  0xe9   : > { %v1686_v14 = vadd.f32 %v1565_v59, %v1409_v47  ;;  %v2155_v41 = vrot.slane %v2053_v42, 2  ;;  %v818_v60 = vadd.f32 %v721_v15, %v556_v20  ;;  %v5376_v10 = vrot.slane %v3975_v50, 2  ;;  %v323_v47 = vld [vmem:[%s3616_s18 + $0xc0] sm:$0xff]  ;;  %v324_v50 = vld [vmem:[%s3616_s18 + $0xc8] sm:$0xff] }
  0xea   : > { %v2472_v31 = vrot.slane %v2354_v61, 7  ;;  %v1999_v26 = vadd.f32 %v1903_v9, %v1786_v17  ;;  %v1149_v61 = vmul.f32 %v4214_v5, %v4094_v27  ;;  %v4396_v15 = vmul.f32 %v4249_v33, %v491_v4 }
  0xeb   : > { %v976_v2 = vsel %vm956_vm1, %v973_v46, %v5376_v10  ;;  %v1787_v52 = vadd.f32 %v1739_v25, %v1686_v14  ;;  %v2156_v59 = vsel %vm956_vm1, %v2154_v6, %v2155_v41  ;;  %v5377_v46 = vrot.slane %v4171_v35, 2 }
  0xec   : > { %v2473_v29 = vsel %vm2418_vm2, %v2470_v0, %v2472_v31  ;;  %v2276_v37 = vadd.f32 %v2154_v6, %v1999_v26  ;;  %v1096_v9 = vadd.f32 %v976_v2, %v818_v60  ;;  %v1740_v25 = vmul.f32 %v4256_v39, %v4316_v24 }
  0xed   : > { %3131 = vmatmul.mubr.f32.gmra.mxu1 %v2473_v29  ;;  %v2000_v17 = vadd.f32 %v1905_v22, %v1787_v52  ;;  %v1567_v0 = vsel %vm956_vm1, %v1564_v32, %v5377_v46  ;;  %v2054_v42 = vmul.f32 %v4275_v63, %v491_v4  ;;  %v4407_v14 = vmax.f32 %v323_v47, 0.0 }
  0xee   : > { %v2331_v20 = vadd.f32 %v4372_v55, %v2276_v37  ;;  %v1197_v31 = vadd.f32 %v1149_v61, %v1096_v9  ;;  %v4409_v10 = vmax.f32 %v324_v50, 0.0  ;;  %v579_v35 = vmul.f32 %v4186_v54, %v3998_v36 }
  0xef   : > { %v2277_v26 = vadd.f32 %v2156_v59, %v2000_v17  ;;  %v2157_v60 = vrot.slane %v2054_v42, 2  ;;  %v669_v2 = vmul.f32 %v4190_v43, %v4001_v57  ;;  %v4417_v37 = vmul.f32 %v4190_v43, %v4407_v14 }
  0xf0   : > { %v2434_v32 = vrot.slane %v2331_v20, 7  ;;  %v1410_v22 = vadd.f32 %v1313_v28, %v1197_v31  ;;  %v893_v52 = vmul.f32 %v4204_v1, %v3998_v36  ;;  %v894_v61 = vmul.f32 %v4204_v1, %v4001_v57 }
  0xf1   : > { %v2332_v4 = vadd.f32 %v4372_v55, %v2277_v26  ;;  %v2158_v29 = vsel %vm956_vm1, %v2155_v41, %v2157_v60  ;;  %v745_v59 = vrot.slane %v669_v2, 1  ;;  %v5348_v28 = vrot.slane %v4417_v37, 1 }
  0xf2   : > { %v1687_v47 = vadd.f32 %v1567_v0, %v1410_v22  ;;  %v1172_v9 = vmul.f32 %v4214_v5, %v4182_v38  ;;  %v1012_v17 = vrot.slane %v893_v52, 2  ;;  %v1013_v46 = vrot.slane %v894_v61, 2 }
  0xf3   : > { %v2435_v50 = vrot.slane %v2332_v4, 7  ;;  %v1261_v42 = vmul.f32 %v4236_v21, %v4182_v38  ;;  %v5378_v20 = vrot.slane %v4014_v40, 1  ;;  %v4436_v0 = vadd.f32 %v5348_v28, %v3641_v16 }
  0xf4   : > { %v1788_v41 = vadd.f32 %v1740_v25, %v1687_v47  ;;  %v4440_v31 = vmul.f32 %v4236_v21, %v4184_v53  ;;  %v1014_v22 = vsel %vm956_vm1, %v1012_v17, %v1013_v46  ;;  %v1118_v25 = vadd.f32 %v1012_v17, %v4031_v11 }
  0xf5   : > { %v746_v36 = vsel %vm710_vm0, %v5378_v20, %v745_v59  ;;  %v2436_v26 = vsel %vm2418_vm2, %v2434_v32, %v2435_v50  ;;  %v1336_v2 = vrot.slane %v1261_v42, 1  ;;  %v1485_v52 = vmul.f32 %v4249_v33, %v4182_v38 }
  0xf6   : > { %v841_v60 = vadd.f32 %v746_v36, %v579_v35  ;;  %3109 = vmatprep.mubr.f32.mxu0 %v2436_v26  ;;  %v2001_v40 = vadd.f32 %v1904_v45, %v1788_v41  ;;  %v1337_v4 = vrot.slane %v4440_v31, 1  ;;  %v1219_v47 = vadd.f32 %v4224_v34, %v1118_v25  ;;  %v523_v25 = vld [vmem:[#allocation2 + $0x200] sm:$0x1] }
  0xf7   : > { %v1486_v20 = vmul.f32 %v4249_v33, %v4184_v53  ;;  %v1763_v35 = vmul.f32 %v4256_v39, %v4407_v14  ;;  %v1603_v17 = vrot.slane %v1485_v52, 2  ;;  %v1852_v45 = vmul.f32 %v4265_v23, %v4407_v14 }
  0xf8   : > { %v1119_v61 = vadd.f32 %v1014_v22, %v841_v60  ;;  %v2278_v32 = vadd.f32 %v2158_v29, %v2001_v40  ;;  %v1338_v11 = vsel %vm710_vm0, %v1336_v2, %v1337_v4  ;;  %v1432_v41 = vadd.f32 %v1336_v2, %v1219_v47 }
  0xf9   : > { %v1604_v36 = vrot.slane %v1486_v20, 2  ;;  %v4458_v31 = vmul.f32 %v4265_v23, %v4409_v10  ;;  %v1927_v60 = vrot.slane %v1852_v45, 1  ;;  %v2076_v22 = vmul.f32 %v4275_v63, %v4407_v14 }
  0xfa   : > { %v1220_v42 = vadd.f32 %v1172_v9, %v1119_v61  ;;  %v2333_v26 = vadd.f32 %v4372_v55, %v2278_v32  ;;  %v2077_v29 = vmul.f32 %v4275_v63, %v4409_v10  ;;  %v1709_v2 = vadd.f32 %v1603_v17, %v1432_v41 }
  0xfb   : > { %v1605_v9 = vsel %vm956_vm1, %v1603_v17, %v1604_v36  ;;  %v1928_v52 = vrot.slane %v4458_v31, 1  ;;  %v2194_v47 = vrot.slane %v2076_v22, 2  ;;  %v580_v32 = vmul.f32 %v4186_v54, %v4001_v57  ;;  %v309_v22 = vld [vmem:[%s3616_s18 + $0x50] sm:$0xff] }
  0xfc   : > { %v1433_v40 = vadd.f32 %v1338_v11, %v1220_v42  ;;  %v2437_v61 = vrot.slane %v2333_v26, 7  ;;  %v2195_v20 = vrot.slane %v2077_v29, 2  ;;  %v1810_v28 = vadd.f32 %v4260_v56, %v1709_v2  ;;  %v310_v2 = vld [vmem:[%s3616_s18 + $0x58] sm:$0xff] }
  0xfd   : > { %v1929_v62 = vsel %vm710_vm0, %v1927_v60, %v1928_v52  ;;  %v4472_v11 = vmul.f32 %v4204_v1, %v523_v25  ;;  %v842_v41 = vadd.f32 %v745_v59, %v580_v32  ;;  %v5379_v31 = vrot.slane %v4067_v48, 2 }
  0xfe   : > { %v1710_v45 = vadd.f32 %v1605_v9, %v1433_v40  ;;  %v2438_v42 = vsel %vm2418_vm2, %v2435_v50, %v2437_v61  ;;  %v2196_v17 = vsel %vm956_vm1, %v2194_v47, %v2195_v20  ;;  %v2023_v29 = vadd.f32 %v1927_v60, %v1810_v28 }
  0xff   : > { %v1016_v26 = vsel %vm956_vm1, %v1013_v46, %v5379_v31  ;;  %3110 = vmatmul.mubr.f32.gmra.mxu0 %v2438_v42  ;;  %v1173_v9 = vmul.f32 %v4214_v5, %v4184_v53  ;;  %v4485_v50 = vmul.f32 %v4249_v33, %v523_v25  ;;  %v1607_v48 = vsel %vm956_vm1, %v1604_v36, %v1606_v49 }
 0x100   : > { %v1811_v57 = vadd.f32 %v1763_v35, %v1710_v45  ;;  %v1120_v6 = vadd.f32 %v1016_v26, %v842_v41  ;;  %v1764_v59 = vmul.f32 %v4256_v39, %v4409_v10  ;;  %v2300_v35 = vadd.f32 %v2194_v47, %v2023_v29 }
 0x101   : > { %v2078_v28 = vmul.f32 %v4275_v63, %v523_v25  ;;  %v4493_v60 = vmax.f32 %v309_v22, 0.0  ;;  %v4496_v45 = vmax.f32 %v310_v2, 0.0  ;;  %v558_v42 = vmul.f32 %v4186_v54, %v4092_v19 }
 0x102   : > { %v2024_v46 = vadd.f32 %v1929_v62, %v1811_v57  ;;  %v1221_v61 = vadd.f32 %v1173_v9, %v1120_v6  ;;  %v2355_v49 = vadd.f32 %v4372_v55, %v2300_v35  ;;  %v655_v62 = vmul.f32 %v4190_v43, %v4094_v27 }
 0x103   : > { %v2197_v36 = vrot.slane %v2078_v28, 2  ;;  %v4505_v25 = vmul.f32 %v4190_v43, %v4493_v60  ;;  %v872_v6 = vmul.f32 %v4204_v1, %v4092_v19  ;;  %v873_v41 = vmul.f32 %v4204_v1, %v4094_v27 }
 0x104   : > { %v2301_v12 = vadd.f32 %v2196_v17, %v2024_v46  ;;  %v1434_v47 = vadd.f32 %v1337_v4, %v1221_v61  ;;  %v2474_v17 = vrot.slane %v2355_v49, 7  ;;  %v724_v22 = vrot.slane %v655_v62, 1 }
 0x105   : > { %v2198_v26 = vsel %vm956_vm1, %v2195_v20, %v2197_v36  ;;  %v5349_v29 = vrot.slane %v4505_v25, 1  ;;  %v977_v4 = vrot.slane %v872_v6, 2  ;;  %v978_v9 = vrot.slane %v873_v41, 2 }
 0x106   : > { %v2356_v31 = vadd.f32 %v4372_v55, %v2301_v12  ;;  %v1711_v57 = vadd.f32 %v1607_v48, %v1434_v47  ;;  %v5380_v46 = vrot.slane %v4103_v30, 1  ;;  %v1151_v19 = vmul.f32 %v4214_v5, %v4314_v7 }
 0x107   : > { %v1247_v28 = vmul.f32 %v4236_v21, %v4314_v7  ;;  %v4524_v20 = vadd.f32 %v5349_v29, %v3641_v16  ;;  %v979_v48 = vsel %vm956_vm1, %v977_v4, %v978_v9  ;;  %v1097_v30 = vadd.f32 %v977_v4, %v4120_v58 }
 0x108   : > { %v2475_v2 = vrot.slane %v2356_v31, 7  ;;  %v725_v35 = vsel %vm710_vm0, %v5380_v46, %v724_v22  ;;  %v1812_v61 = vadd.f32 %v1764_v59, %v1711_v57  ;;  %v1248_v36 = vmul.f32 %v4236_v21, %v4316_v24 }
 0x109   : > { %v820_v12 = vadd.f32 %v725_v35, %v558_v42  ;;  %v1315_v62 = vrot.slane %v1247_v28, 1  ;;  %v1464_v59 = vmul.f32 %v4249_v33, %v4314_v7  ;;  %v1465_v42 = vmul.f32 %v4249_v33, %v4316_v24 }
 0x10a   : > { %v2476_v49 = vsel %vm2418_vm2, %v2474_v17, %v2475_v2  ;;  %v2025_v47 = vadd.f32 %v1928_v52, %v1812_v61  ;;  %v1198_v41 = vadd.f32 %v4224_v34, %v1097_v30  ;;  %v1316_v31 = vrot.slane %v1248_v36, 1 }
 0x10b   : > { %3133 = vmatprep.mubr.f32.mxu1 %v2476_v49  ;;  %v1098_v6 = vadd.f32 %v979_v48, %v820_v12  ;;  %v1742_v17 = vmul.f32 %v4256_v39, %v4493_v60  ;;  %v1838_v58 = vmul.f32 %v4265_v23, %v4493_v60  ;;  %v1568_v46 = vrot.slane %v1464_v59, 2  ;;  %v495_v48 = vld [vmem:[#allocation2 + $0x38] sm:$0x1] }
 0x10c   : > { %v2302_v57 = vadd.f32 %v2198_v26, %v2025_v47  ;;  %v1569_v52 = vrot.slane %v1465_v42, 2  ;;  %v1317_v35 = vsel %vm710_vm0, %v1315_v62, %v1316_v31  ;;  %v1411_v28 = vadd.f32 %v1315_v62, %v1198_v41 }
 0x10d   : > { %v1199_v4 = vadd.f32 %v1151_v19, %v1098_v6  ;;  %v4543_v61 = vmul.f32 %v4265_v23, %v4496_v45  ;;  %v1906_v12 = vrot.slane %v1838_v58, 1  ;;  %v2055_v26 = vmul.f32 %v4275_v63, %v4493_v60 }
 0x10e   : > { %v2357_v49 = vadd.f32 %v4372_v55, %v2302_v57  ;;  %v1570_v36 = vsel %vm956_vm1, %v1568_v46, %v1569_v52  ;;  %v1688_v19 = vadd.f32 %v1568_v46, %v1411_v28  ;;  %v2056_v62 = vmul.f32 %v4275_v63, %v4496_v45 }
 0x10f   : > { %v1412_v30 = vadd.f32 %v1317_v35, %v1199_v4  ;;  %v1907_v47 = vrot.slane %v4543_v61, 1  ;;  %v559_v6 = vmul.f32 %v4186_v54, %v4094_v27  ;;  %v2159_v41 = vrot.slane %v2055_v26, 2 }
 0x110   : > { %v2477_v59 = vrot.slane %v2357_v49, 7  ;;  %v4555_v58 = vmul.f32 %v4204_v1, %v495_v48  ;;  %v1789_v57 = vadd.f32 %v4260_v56, %v1688_v19  ;;  %v2160_v46 = vrot.slane %v2056_v62, 2  ;;  %v326_v62 = vld [vmem:[%s3616_s18 + $0xd8] sm:$0xff] }
 0x111   : > { %v1689_v42 = vadd.f32 %v1570_v36, %v1412_v30  ;;  %v1908_v4 = vsel %vm710_vm0, %v1906_v12, %v1907_v47  ;;  %v821_v35 = vadd.f32 %v724_v22, %v559_v6  ;;  %v5381_v29 = vrot.slane %v4159_v8, 2  ;;  %v325_v30 = vld [vmem:[%s3616_s18 + $0xd0] sm:$0xff] }
 0x112   : > { %v2478_v28 = vsel %vm2418_vm2, %v2475_v2, %v2477_v59  ;;  %v2002_v36 = vadd.f32 %v1906_v12, %v1789_v57  ;;  %v2161_v26 = vsel %vm956_vm1, %v2159_v41, %v2160_v46  ;;  %v1152_v19 = vmul.f32 %v4214_v5, %v4316_v24 }
 0x113   : > { %v1790_v61 = vadd.f32 %v1742_v17, %v1689_v42  ;;  %v981_v27 = vsel %vm956_vm1, %v978_v9, %v5381_v29  ;;  %3134 = vmatmul.mubr.f32.gmra.mxu1 %v2478_v28  ;;  %v4570_v2 = vmul.f32 %v4249_v33, %v495_v48  ;;  %v5382_v8 = vrot.slane %v4396_v15, 2 }
 0x114   : > { %v1099_v40 = vadd.f32 %v981_v27, %v821_v35  ;;  %v1743_v9 = vmul.f32 %v4256_v39, %v4496_v45  ;;  %v2279_v17 = vadd.f32 %v2159_v41, %v2002_v36  ;;  %v2057_v6 = vmul.f32 %v4275_v63, %v495_v48 }
 0x115   : > { %v2003_v22 = vadd.f32 %v1908_v4, %v1790_v61  ;;  %v1572_v29 = vsel %vm956_vm1, %v1569_v52, %v5382_v8  ;;  %v4578_v59 = vmax.f32 %v325_v30, 0.0  ;;  %v4581_v4 = vmax.f32 %v326_v62, 0.0 }
 0x116   : > { %v1200_v12 = vadd.f32 %v1152_v19, %v1099_v40  ;;  %v582_v35 = vmul.f32 %v4186_v54, %v4182_v38  ;;  %v2334_v15 = vadd.f32 %v4372_v55, %v2279_v17  ;;  %v2162_v28 = vrot.slane %v2057_v6, 2 }
 0x117   : > { %v2280_v42 = vadd.f32 %v2161_v26, %v2003_v22  ;;  %v671_v41 = vmul.f32 %v4190_v43, %v4184_v53  ;;  %v4591_v48 = vmul.f32 %v4190_v43, %v4578_v59  ;;  %v896_v61 = vmul.f32 %v4204_v1, %v4182_v38 }
 0x118   : > { %v1413_v52 = vadd.f32 %v1316_v31, %v1200_v12  ;;  %v897_v27 = vmul.f32 %v4204_v1, %v4184_v53  ;;  %v2439_v30 = vrot.slane %v2334_v15, 7  ;;  %v2163_v31 = vsel %vm956_vm1, %v2160_v46, %v2162_v28 }
 0x119   : > { %v2335_v40 = vadd.f32 %v4372_v55, %v2280_v42  ;;  %v748_v26 = vrot.slane %v671_v41, 1  ;;  %v5350_v62 = vrot.slane %v4591_v48, 1  ;;  %v1017_v22 = vrot.slane %v896_v61, 2 }
 0x11a   : > { %v1690_v36 = vadd.f32 %v1572_v29, %v1413_v52  ;;  %v1018_v8 = vrot.slane %v897_v27, 2  ;;  %v5383_v12 = vrot.slane %v4198_v44, 1  ;;  %v1175_v38 = vmul.f32 %v4214_v5, %v4407_v14  ;;  %v5384_v52 = vld [vmem:[#allocation14_spill] sm:$0xff] }
 0x11b   : > { %v2440_v19 = vrot.slane %v2335_v40, 7  ;;  %v1263_v42 = vmul.f32 %v4236_v21, %v4407_v14  ;;  %v4610_v15 = vadd.f32 %v5350_v62, %v3641_v16  ;;  %v1121_v28 = vadd.f32 %v1017_v22, %v5384_v52 }
 0x11c   : > { %v1791_v17 = vadd.f32 %v1743_v9, %v1690_v36  ;;  %v749_v6 = vsel %vm710_vm0, %v5383_v12, %v748_v26  ;;  %v1019_v9 = vsel %vm956_vm1, %v1017_v22, %v1018_v8  ;;  %v1264_v41 = vmul.f32 %v4236_v21, %v4409_v10 }
 0x11d   : > { %v2441_v29 = vsel %vm2418_vm2, %v2439_v30, %v2440_v19  ;;  %v844_v46 = vadd.f32 %v749_v6, %v582_v35  ;;  %v1339_v40 = vrot.slane %v1263_v42, 1  ;;  %v1488_v27 = vmul.f32 %v4249_v33, %v4407_v14 }
 0x11e   : > { %3112 = vmatprep.mubr.f32.mxu0 %v2441_v29  ;;  %v2004_v44 = vadd.f32 %v1907_v47, %v1791_v17  ;;  %v1489_v35 = vmul.f32 %v4249_v33, %v4409_v10  ;;  %v1766_v30 = vmul.f32 %v4256_v39, %v4578_v59  ;;  %v1222_v12 = vadd.f32 %v4224_v34, %v1121_v28 }
 0x11f   : > { %v1122_v61 = vadd.f32 %v1019_v9, %v844_v46  ;;  %v1340_v47 = vrot.slane %v1264_v41, 1  ;;  %v1854_v22 = vmul.f32 %v4265_v23, %v4578_v59  ;;  %v1608_v6 = vrot.slane %v1488_v27, 2 }
 0x120   : > { %v2281_v36 = vadd.f32 %v2163_v31, %v2004_v44  ;;  %v1609_v42 = vrot.slane %v1489_v35, 2  ;;  %v4627_v29 = vmul.f32 %v4265_v23, %v4581_v4  ;;  %v1435_v52 = vadd.f32 %v1339_v40, %v1222_v12  ;;  %v527_v31 = vld [vmem:[#allocation2 + $0x208] sm:$0x1] }
 0x121   : > { %v1223_v17 = vadd.f32 %v1175_v38, %v1122_v61  ;;  %v1341_v9 = vsel %vm710_vm0, %v1339_v40, %v1340_v47  ;;  %v1930_v62 = vrot.slane %v1854_v22, 1  ;;  %v2079_v38 = vmul.f32 %v4275_v63, %v4578_v59 }
 0x122   : > { %v2336_v46 = vadd.f32 %v4372_v55, %v2281_v36  ;;  %v1610_v28 = vsel %vm956_vm1, %v1608_v6, %v1609_v42  ;;  %v1931_v41 = vrot.slane %v4627_v29, 1  ;;  %v1712_v27 = vadd.f32 %v1608_v6, %v1435_v52 }
 0x123   : > { %v1436_v44 = vadd.f32 %v1341_v9, %v1223_v17  ;;  %v2080_v35 = vmul.f32 %v4275_v63, %v4581_v4  ;;  %v583_v36 = vmul.f32 %v4186_v54, %v4184_v53  ;;  %v2199_v22 = vrot.slane %v2079_v38, 2  ;;  %v311_v38 = vld [vmem:[%s3616_s18 + $0x60] sm:$0xff] }
 0x124   : > { %v2442_v61 = vrot.slane %v2336_v46, 7  ;;  %v1932_v12 = vsel %vm710_vm0, %v1930_v62, %v1931_v41  ;;  %v4641_v17 = vmul.f32 %v4204_v1, %v527_v31  ;;  %v1813_v46 = vadd.f32 %v4260_v56, %v1712_v27 }
 0x125   : > { %v1713_v40 = vadd.f32 %v1610_v28, %v1436_v44  ;;  %v2200_v6 = vrot.slane %v2080_v35, 2  ;;  %v845_v9 = vadd.f32 %v748_v26, %v583_v36  ;;  %v5385_v49 = vrot.slane %v4287_v13, 2  ;;  %v312_v26 = vld [vmem:[%s3616_s18 + $0x68] sm:$0xff] }
 0x126   : > { %v2443_v29 = vsel %vm2418_vm2, %v2440_v19, %v2442_v61  ;;  %v1176_v28 = vmul.f32 %v4214_v5, %v4409_v10  ;;  %v2026_v57 = vadd.f32 %v1930_v62, %v1813_v46  ;;  %v4654_v61 = vmul.f32 %v4249_v33, %v527_v31 }
 0x127   : > { %3113 = vmatmul.mubr.f32.gmra.mxu0 %v2443_v29  ;;  %v1814_v52 = vadd.f32 %v1766_v30, %v1713_v40  ;;  %v1021_v53 = vsel %vm956_vm1, %v1018_v8, %v5385_v49  ;;  %v2201_v32 = vsel %vm956_vm1, %v2199_v22, %v2200_v6  ;;  %v5386_v30 = vrot.slane %v4485_v50, 2 }
 0x128   : > { %v1123_v19 = vadd.f32 %v1021_v53, %v845_v9  ;;  %v1767_v49 = vmul.f32 %v4256_v39, %v4581_v4  ;;  %v2081_v8 = vmul.f32 %v4275_v63, %v527_v31  ;;  %v2303_v35 = vadd.f32 %v2199_v22, %v2026_v57 }
 0x129   : > { %v2027_v27 = vadd.f32 %v1932_v12, %v1814_v52  ;;  %v1612_v13 = vsel %vm956_vm1, %v1609_v42, %v5386_v30  ;;  %v1616_v62 = vrot.slane %v4654_v61, 2  ;;  %v4664_v40 = vmax.f32 %v311_v38, 0.0 }
 0x12a   : > { %v1224_v36 = vadd.f32 %v1176_v28, %v1123_v19  ;;  %v2202_v46 = vrot.slane %v2081_v8, 2  ;;  %v4666_v9 = vmax.f32 %v312_v26, 0.0  ;;  %v561_v50 = vmul.f32 %v4186_v54, %v4314_v7 }
 0x12b   : > { %v2304_v29 = vadd.f32 %v2201_v32, %v2027_v27  ;;  %v2358_v42 = vadd.f32 %v4372_v55, %v2303_v35  ;;  %v657_v52 = vmul.f32 %v4190_v43, %v4316_v24  ;;  %v4675_v57 = vmul.f32 %v4190_v43, %v4664_v40 }
 0x12c   : > { %v1437_v12 = vadd.f32 %v1340_v47, %v1224_v36  ;;  %v2203_v32 = vsel %vm956_vm1, %v2200_v6, %v2202_v46  ;;  %v875_v22 = vmul.f32 %v4204_v1, %v4314_v7  ;;  %v876_v53 = vmul.f32 %v4204_v1, %v4316_v24 }
 0x12d   : > { %v2359_v31 = vadd.f32 %v4372_v55, %v2304_v29  ;;  %v2479_v28 = vrot.slane %v2358_v42, 7  ;;  %v727_v47 = vrot.slane %v657_v52, 1  ;;  %v5352_v19 = vrot.slane %v4675_v57, 1 }
 0x12e   : > { %v1714_v38 = vadd.f32 %v1612_v13, %v1437_v12  ;;  %v982_v27 = vrot.slane %v875_v22, 2  ;;  %v983_v30 = vrot.slane %v876_v53, 2  ;;  %v1154_v43 = vmul.f32 %v4214_v5, %v4493_v60 }
 0x12f   : > { %v2480_v26 = vrot.slane %v2359_v31, 7  ;;  %v5387_v6 = vrot.slane %v4325_v51, 1  ;;  %v4692_v7 = vadd.f32 %v5352_v19, %v3641_v16  ;;  %v1249_v13 = vmul.f32 %v4236_v21, %v4493_v60 }
 0x130   : > { %v1815_v8 = vadd.f32 %v1767_v49, %v1714_v38  ;;  %v984_v46 = vsel %vm956_vm1, %v982_v27, %v983_v30  ;;  %v1100_v42 = vadd.f32 %v982_v27, %v4342_v18  ;;  %v1250_v51 = vmul.f32 %v4236_v21, %v4496_v45 }
 0x131   : > { %v728_v35 = vsel %vm710_vm0, %v5387_v6, %v727_v47  ;;  %v2481_v36 = vsel %vm2418_vm2, %v2479_v28, %v2480_v26  ;;  %v1318_v12 = vrot.slane %v1249_v13, 1  ;;  %v1467_v16 = vmul.f32 %v4249_v33, %v4493_v60 }
 0x132   : > { %v823_v29 = vadd.f32 %v728_v35, %v561_v50  ;;  %3136 = vmatprep.mubr.f32.mxu1 %v2481_v36  ;;  %v2028_v49 = vadd.f32 %v1931_v41, %v1815_v8  ;;  %v1201_v31 = vadd.f32 %v4224_v34, %v1100_v42  ;;  %v1468_v22 = vmul.f32 %v4249_v33, %v4496_v45  ;;  %v499_v36 = vld [vmem:[#allocation2 + $0x1c8] sm:$0x1] }
 0x133   : > { %v1745_v50 = vmul.f32 %v4256_v39, %v4664_v40  ;;  %v1319_v18 = vrot.slane %v1250_v51, 1  ;;  %v1573_v28 = vrot.slane %v1467_v16, 2  ;;  %v1840_v41 = vmul.f32 %v4265_v23, %v4664_v40 }
 0x134   : > { %v1101_v52 = vadd.f32 %v984_v46, %v823_v29  ;;  %v2305_v53 = vadd.f32 %v2203_v32, %v2028_v49  ;;  %v1414_v38 = vadd.f32 %v1318_v12, %v1201_v31  ;;  %v1574_v27 = vrot.slane %v1468_v22, 2 }
 0x135   : > { %v4712_v8 = vmul.f32 %v4265_v23, %v4666_v9  ;;  %v1320_v35 = vsel %vm710_vm0, %v1318_v12, %v1319_v18  ;;  %v1909_v13 = vrot.slane %v1840_v41, 1  ;;  %v2058_v32 = vmul.f32 %v4275_v63, %v4664_v40 }
 0x136   : > { %v1202_v21 = vadd.f32 %v1154_v43, %v1101_v52  ;;  %v2360_v6 = vadd.f32 %v4372_v55, %v2305_v53  ;;  %v1575_v46 = vsel %vm956_vm1, %v1573_v28, %v1574_v27  ;;  %v1691_v42 = vadd.f32 %v1573_v28, %v1414_v38 }
 0x137   : > { %v1910_v43 = vrot.slane %v4712_v8, 1  ;;  %v2059_v23 = vmul.f32 %v4275_v63, %v4666_v9  ;;  %v2164_v51 = vrot.slane %v2058_v32, 2  ;;  %v562_v12 = vmul.f32 %v4186_v54, %v4316_v24  ;;  %v328_v32 = vld [vmem:[%s3616_s18 + $0xe8] sm:$0xff] }
 0x138   : > { %v1415_v29 = vadd.f32 %v1320_v35, %v1202_v21  ;;  %v2482_v49 = vrot.slane %v2360_v6, 7  ;;  %v1792_v52 = vadd.f32 %v4260_v56, %v1691_v42  ;;  %v4729_v22 = vmul.f32 %v4204_v1, %v499_v36  ;;  %v327_v35 = vld [vmem:[%s3616_s18 + $0xe0] sm:$0xff] }
 0x139   : > { %v1911_v31 = vsel %vm710_vm0, %v1909_v13, %v1910_v43  ;;  %v2165_v28 = vrot.slane %v2059_v23, 2  ;;  %v824_v41 = vadd.f32 %v727_v47, %v562_v12  ;;  %v5388_v21 = vrot.slane %v4384_v3, 2 }
 0x13a   : > { %v1692_v16 = vadd.f32 %v1575_v46, %v1415_v29  ;;  %v2483_v53 = vsel %vm2418_vm2, %v2480_v26, %v2482_v49  ;;  %v2005_v24 = vadd.f32 %v1909_v13, %v1792_v52  ;;  %v1155_v6 = vmul.f32 %v4214_v5, %v4496_v45 }
 0x13b   : > { %v986_v38 = vsel %vm956_vm1, %v983_v30, %v5388_v21  ;;  %3137 = vmatmul.mubr.f32.gmra.mxu1 %v2483_v53  ;;  %v2166_v1 = vsel %vm956_vm1, %v2164_v51, %v2165_v28  ;;  %v4742_v26 = vmul.f32 %v4249_v33, %v499_v36  ;;  %v5389_v3 = vrot.slane %v4570_v2, 2 }
 0x13c   : > { %v1793_v54 = vadd.f32 %v1745_v50, %v1692_v16  ;;  %v1102_v29 = vadd.f32 %v986_v38, %v824_v41  ;;  %v2282_v50 = vadd.f32 %v2164_v51, %v2005_v24  ;;  %v1746_v13 = vmul.f32 %v4256_v39, %v4666_v9  ;;  %v4756_v16 = vld [vmem:[#allocation6] ss:$0 sm:$0xff]  ;;  %v5390_v39 = vld [vmem:[#allocation13_spill] sm:$0xff] }
 0x13d   : > { %v1577_v47 = vsel %vm956_vm1, %v1574_v27, %v5389_v3  ;;  %v2060_v46 = vmul.f32 %v4275_v63, %v499_v36  ;;  %v4751_v49 = vmax.f32 %v327_v35, 0.0  ;;  %v4753_v23 = vmax.f32 %v328_v32, 0.0  ;;  %v4762_v36 = vld [vmem:[#allocation6 + $0x1] ss:$0 sm:$0xff]  ;;  %v4791_v3 = vld [vmem:[#allocation2 + $0xc8] sm:$0xff] }
 0x13e   : > { %v2006_v30 = vadd.f32 %v1911_v31, %v1793_v54  ;;  %v1203_v5 = vadd.f32 %v1155_v6, %v1102_v29  ;;  %v2337_v12 = vadd.f32 %v4372_v55, %v2282_v50  ;;  %v585_v27 = vmul.f32 %v4756_v16, %v4407_v14  ;;  %v4787_v29 = vld [vmem:[#allocation6 + $0x3] ss:$0 sm:$0xff] }
 0x13f   : > { %v2167_v2 = vrot.slane %v2060_v46, 2  ;;  %v590_v63 = vmul.f32 %v4756_v16, %v5390_v39  ;;  %v4766_v52 = vmul.f32 %v4762_v36, %v4409_v10  ;;  %v4770_v31 = vmul.f32 %v4762_v36, %v4751_v49 }
 0x140   : > { %v2283_v33 = vadd.f32 %v2166_v1, %v2006_v30  ;;  %v1416_v51 = vadd.f32 %v1319_v18, %v1203_v5  ;;  %v2444_v41 = vrot.slane %v2337_v12, 7  ;;  %v4776_v18 = vld [vmem:[#allocation6 + $0x2] ss:$0 sm:$0xff]  ;;  %v5391_v30 = vrot.slane %v4417_v37, 1 }
 0x141   : > { %v2168_v21 = vsel %vm956_vm1, %v2165_v28, %v2167_v2  ;;  %v899_v38 = vmul.f32 %v4776_v18, %v4407_v14  ;;  %v751_v24 = vrot.slane %v4766_v52, 1  ;;  %v5351_v6 = vrot.slane %v4770_v31, 1 }
 0x142   : > { %v4773_v53 = vadd.f32 %v4372_v55, %v2283_v33  ;;  %v1693_v54 = vadd.f32 %v1577_v47, %v1416_v51  ;;  %v4784_v35 = vmul.f32 %v4776_v18, %v4409_v10  ;;  %v1178_v28 = vmul.f32 %v4787_v29, %v4578_v59  ;;  %v4809_v51 = vld [vmem:[#allocation6 + $0x4] ss:$0 sm:$0xff] }
 0x143   : > { %v1022_v1 = vrot.slane %v899_v38, 2  ;;  %v4795_v14 = vmul.f32 %v4791_v3, %v4787_v29  ;;  %v752_v50 = vsel %vm710_vm0, %v5391_v30, %v751_v24  ;;  %v4804_v46 = vadd.f32 %v5351_v6, %v590_v63 }
 0x144   : > { %v2445_v32 = vrot.slane %v4773_v53, 7  ;;  %v1794_v47 = vadd.f32 %v1746_v13, %v1693_v54  ;;  %v1023_v5 = vrot.slane %v4784_v35, 2  ;;  %v847_v12 = vadd.f32 %v752_v50, %v585_v27  ;;  %v4820_v53 = vld [vmem:[#allocation6 + $0x5] ss:$0 sm:$0xff] }
 0x145   : > { %v1124_v2 = vadd.f32 %v1022_v1, %v4436_v0  ;;  %v1265_v13 = vmul.f32 %v4809_v51, %v4578_v59  ;;  %v4818_v63 = vmul.f32 %v4809_v51, %v4581_v4  ;;  %v1491_v0 = vmul.f32 %v4820_v53, %v4578_v59 }
 0x146   : > { %v2446_v33 = vsel %vm2418_vm2, %v2444_v41, %v2445_v32  ;;  %v2007_v37 = vadd.f32 %v1910_v43, %v1794_v47  ;;  %v1024_v39 = vsel %vm956_vm1, %v1022_v1, %v1023_v5  ;;  %v1492_v54 = vmul.f32 %v4820_v53, %v4581_v4  ;;  %v4828_v1 = vld [vmem:[#allocation6 + $0x6] ss:$0 sm:$0xff] }
 0x147   : > { %3115 = vmatprep.mubr.f32.mxu0 %v2446_v33  ;;  %v1125_v27 = vadd.f32 %v1024_v39, %v847_v12  ;;  %v1225_v41 = vadd.f32 %v4224_v34, %v1124_v2  ;;  %v1342_v38 = vrot.slane %v1265_v13, 1  ;;  %v1343_v43 = vrot.slane %v4818_v63, 1 }
 0x148   : > { %v2284_v8 = vadd.f32 %v2168_v21, %v2007_v37  ;;  %v1613_v35 = vrot.slane %v1491_v0, 2  ;;  %v4832_v47 = vmul.f32 %v4828_v1, %v4791_v3  ;;  %v1614_v33 = vrot.slane %v1492_v54, 2  ;;  %v4838_v21 = vld [vmem:[#allocation6 + $0x7] ss:$0 sm:$0xff]  ;;  %v531_v54 = vld [vmem:[#allocation2 + $0xc0] sm:$0x1] }
 0x149   : > { %v1226_v30 = vadd.f32 %v1178_v28, %v1125_v27  ;;  %v1438_v50 = vadd.f32 %v1342_v38, %v1225_v41  ;;  %v1769_v12 = vmul.f32 %v4828_v1, %v4751_v49  ;;  %v1344_v13 = vsel %vm710_vm0, %v1342_v38, %v1343_v43  ;;  %v4847_v27 = vld [vmem:[#allocation6 + $0x8] ss:$0 sm:$0xff] }
 0x14a   : > { %v2339_v2 = vadd.f32 %v4372_v55, %v2284_v8  ;;  %v1856_v37 = vmul.f32 %v4838_v21, %v4751_v49  ;;  %v4844_v39 = vmul.f32 %v4838_v21, %v4753_v23  ;;  %v1615_v28 = vsel %vm956_vm1, %v1613_v35, %v1614_v33 }
 0x14b   : > { %v1439_v63 = vadd.f32 %v1344_v13, %v1226_v30  ;;  %v1715_v0 = vadd.f32 %v1613_v35, %v1438_v50  ;;  %v2082_v41 = vmul.f32 %v4847_v27, %v4751_v49  ;;  %v2083_v56 = vmul.f32 %v4847_v27, %v4753_v23 }
 0x14c   : > { %v2447_v38 = vrot.slane %v2339_v2, 7  ;;  %v1933_v8 = vrot.slane %v1856_v37, 1  ;;  %v1934_v6 = vrot.slane %v4844_v39, 1  ;;  %v586_v35 = vmul.f32 %v4756_v16, %v4409_v10 }
 0x14d   : > { %v1716_v19 = vadd.f32 %v1615_v28, %v1439_v63  ;;  %v1816_v44 = vadd.f32 %v4832_v47, %v1715_v0  ;;  %v2204_v30 = vrot.slane %v2082_v41, 2  ;;  %v2205_v42 = vrot.slane %v2083_v56, 2 }
 0x14e   : > { %v2448_v50 = vsel %vm2418_vm2, %v2445_v32, %v2447_v38  ;;  %v1935_v13 = vsel %vm710_vm0, %v1933_v8, %v1934_v6  ;;  %v4860_v2 = vmul.f32 %v4776_v18, %v531_v54  ;;  %v848_v63 = vadd.f32 %v751_v24, %v586_v35 }
 0x14f   : > { %3116 = vmatmul.mubr.f32.gmra.mxu0 %v2448_v50  ;;  %v1817_v37 = vadd.f32 %v1769_v12, %v1716_v19  ;;  %v2029_v39 = vadd.f32 %v1933_v8, %v1816_v44  ;;  %v5392_v28 = vrot.slane %v4472_v11, 2  ;;  %v2206_v10 = vsel %vm956_vm1, %v2204_v30, %v2205_v42 }
 0x150   : > { %v1035_v32 = vrot.slane %v4860_v2, 2  ;;  %v1179_v56 = vmul.f32 %v4787_v29, %v4581_v4  ;;  %v4872_v41 = vmul.f32 %v4820_v53, %v531_v54  ;;  %v1617_v52 = vsel %vm956_vm1, %v1614_v33, %v1616_v62 }
 0x151   : > { %v1026_v0 = vsel %vm956_vm1, %v1023_v5, %v5392_v28  ;;  %v2030_v38 = vadd.f32 %v1935_v13, %v1817_v37  ;;  %v2306_v19 = vadd.f32 %v2204_v30, %v2029_v39  ;;  %v1770_v24 = vmul.f32 %v4828_v1, %v4753_v23 }
 0x152   : > { %v1126_v44 = vadd.f32 %v1026_v0, %v848_v63  ;;  %v1621_v11 = vrot.slane %v4872_v41, 2  ;;  %v2084_v5 = vmul.f32 %v4847_v27, %v531_v54  ;;  %v564_v12 = vmul.f32 %v4756_v16, %v4493_v60 }
 0x153   : > { %v2307_v8 = vadd.f32 %v2206_v10, %v2030_v38  ;;  %v2361_v35 = vadd.f32 %v4372_v55, %v2306_v19  ;;  %v659_v30 = vmul.f32 %v4762_v36, %v4496_v45  ;;  %v878_v62 = vmul.f32 %v4776_v18, %v4493_v60 }
 0x154   : > { %v1227_v50 = vadd.f32 %v1179_v56, %v1126_v44  ;;  %v2207_v61 = vrot.slane %v2084_v5, 2  ;;  %v879_v33 = vmul.f32 %v4776_v18, %v4496_v45  ;;  %v1157_v54 = vmul.f32 %v4787_v29, %v4664_v40 }
 0x155   : > { %v4893_v13 = vadd.f32 %v4372_v55, %v2307_v8  ;;  %v2484_v37 = vrot.slane %v2361_v35, 7  ;;  %v730_v63 = vrot.slane %v659_v30, 1  ;;  %v987_v0 = vrot.slane %v878_v62, 2  ;;  %v4915_v62 = vld [vmem:[#allocation2 + $0xf8] sm:$0xff] }
 0x156   : > { %v1440_v39 = vadd.f32 %v1343_v43, %v1227_v50  ;;  %v2208_v28 = vsel %vm956_vm1, %v2205_v42, %v2207_v61  ;;  %v988_v10 = vrot.slane %v879_v33, 2  ;;  %v1251_v56 = vmul.f32 %v4809_v51, %v4664_v40 }
 0x157   : > { %v2485_v60 = vrot.slane %v4893_v13, 7  ;;  %v5393_v19 = vrot.slane %v4505_v25, 1  ;;  %v4904_v55 = vmul.f32 %v4809_v51, %v4666_v9  ;;  %v1103_v42 = vadd.f32 %v987_v0, %v4524_v20 }
 0x158   : > { %v1717_v38 = vadd.f32 %v1617_v52, %v1440_v39  ;;  %v989_v5 = vsel %vm956_vm1, %v987_v0, %v988_v10  ;;  %v1321_v8 = vrot.slane %v1251_v56, 1  ;;  %v1470_v25 = vmul.f32 %v4820_v53, %v4664_v40 }
 0x159   : > { %v731_v44 = vsel %vm710_vm0, %v5393_v19, %v730_v63  ;;  %v2486_v35 = vsel %vm2418_vm2, %v2484_v37, %v2485_v60  ;;  %v1322_v30 = vrot.slane %v4904_v55, 1  ;;  %v1204_v61 = vadd.f32 %v4224_v34, %v1103_v42 }
 0x15a   : > { %v826_v43 = vadd.f32 %v731_v44, %v564_v12  ;;  %v1818_v50 = vadd.f32 %v1770_v24, %v1717_v38  ;;  %3139 = vmatprep.mubr.f32.mxu1 %v2486_v35  ;;  %v1471_v12 = vmul.f32 %v4820_v53, %v4666_v9  ;;  %v1748_v20 = vmul.f32 %v4915_v62, %v4828_v1  ;;  %v4922_v38 = vld [vmem:[#allocation2 + $0x78] sm:$0xff] }
 0x15b   : > { %v1323_v24 = vsel %vm710_vm0, %v1321_v8, %v1322_v30  ;;  %v1578_v13 = vrot.slane %v1470_v25, 2  ;;  %v1842_v37 = vmul.f32 %v4915_v62, %v4838_v21  ;;  %v1417_v0 = vadd.f32 %v1321_v8, %v1204_v61  ;;  %v4937_v8 = vld [vmem:[%s5328_s2] ss:$0 sm:$0xff] }
 0x15c   : > { %v1104_v52 = vadd.f32 %v989_v5, %v826_v43  ;;  %v2031_v33 = vadd.f32 %v1934_v6, %v1818_v50  ;;  %v1579_v56 = vrot.slane %v1471_v12, 2  ;;  %v4926_v34 = vmul.f32 %v4922_v38, %v4838_v21 }
 0x15d   : > { %v1912_v44 = vrot.slane %v1842_v37, 1  ;;  %v2061_v6 = vmul.f32 %v4915_v62, %v4847_v27  ;;  %v2062_v55 = vmul.f32 %v4922_v38, %v4847_v27  ;;  %v1694_v5 = vadd.f32 %v1578_v13, %v1417_v0 }
 0x15e   : > { %v1205_v39 = vadd.f32 %v1157_v54, %v1104_v52  ;;  %v2308_v19 = vadd.f32 %v2208_v28, %v2031_v33  ;;  %v1580_v54 = vsel %vm956_vm1, %v1578_v13, %v1579_v56  ;;  %v1913_v42 = vrot.slane %v4926_v34, 1  ;;  %v329_v13 = vld [vmem:[%s3616_s18 + $0xf0] sm:$0xff] }
 0x15f   : > { %v2169_v35 = vrot.slane %v2061_v6, 2  ;;  %v2170_v50 = vrot.slane %v2062_v55, 2  ;;  %v565_v25 = vmul.f32 %v4756_v16, %v4496_v45  ;;  %v1795_v61 = vadd.f32 %v4832_v47, %v1694_v5  ;;  %v330_v45 = vld [vmem:[%s3616_s18 + $0xf8] sm:$0xff] }
 0x160   : > { %v1418_v43 = vadd.f32 %v1323_v24, %v1205_v39  ;;  %v2363_v28 = vadd.f32 %v4937_v8, %v2308_v19  ;;  %v1914_v12 = vsel %vm710_vm0, %v1912_v44, %v1913_v42  ;;  %v5394_v33 = vrot.slane %v4555_v58, 2 }
 0x161   : > { %v2171_v39 = vsel %vm956_vm1, %v2169_v35, %v2170_v50  ;;  %v827_v0 = vadd.f32 %v730_v63, %v565_v25  ;;  %v1158_v19 = vmul.f32 %v4787_v29, %v4666_v9  ;;  %v2008_v55 = vadd.f32 %v1912_v44, %v1795_v61 }
 0x162   : > { %v1695_v52 = vadd.f32 %v1580_v54, %v1418_v43  ;;  %v991_v24 = vsel %vm956_vm1, %v988_v10, %v5394_v33  ;;  %v2487_v37 = vrot.slane %v2363_v28, 7  ;;  %v5395_v43 = vrot.slane %v4742_v26, 2  ;;  %v4960_v28 = vld [vmem:[#allocation2 + $0x170] sm:$0x1] }
 0x163   : > { %v1749_v58 = vmul.f32 %v4922_v38, %v4828_v1  ;;  %v1105_v5 = vadd.f32 %v991_v24, %v827_v0  ;;  %v2063_v63 = vmul.f32 %v4960_v28, %v4847_v27  ;;  %v4964_v25 = vmax.f32 %v329_v13, 0.0 }
 0x164   : > { %v1796_v6 = vadd.f32 %v1748_v20, %v1695_v52  ;;  %v1582_v54 = vsel %vm956_vm1, %v1579_v56, %v5395_v43  ;;  %v2488_v10 = vsel %vm2418_vm2, %v2485_v60, %v2487_v37  ;;  %v2285_v44 = vadd.f32 %v2169_v35, %v2008_v55 }
 0x165   : > { %3140 = vmatmul.mubr.f32.gmra.mxu1 %v2488_v10  ;;  %v4966_v52 = vmax.f32 %v330_v45, 0.0  ;;  %v588_v26 = vmul.f32 %v4756_v16, %v4578_v59  ;;  %v1206_v56 = vadd.f32 %v1158_v19, %v1105_v5  ;;  %v2172_v61 = vrot.slane %v2063_v63, 2 }
 0x166   : > { %v2009_v20 = vadd.f32 %v1914_v12, %v1796_v6  ;;  %v675_v60 = vmul.f32 %v4762_v36, %v4581_v4  ;;  %v902_v33 = vmul.f32 %v4776_v18, %v4578_v59  ;;  %v2340_v13 = vadd.f32 %v4937_v8, %v2285_v44 }
 0x167   : > { %v903_v12 = vmul.f32 %v4776_v18, %v4581_v4  ;;  %v1181_v35 = vmul.f32 %v4787_v29, %v4751_v49  ;;  %v1419_v37 = vadd.f32 %v1322_v30, %v1206_v56  ;;  %v2173_v0 = vsel %vm956_vm1, %v2170_v50, %v2172_v61 }
 0x168   : > { %v2286_v24 = vadd.f32 %v2171_v39, %v2009_v20  ;;  %v754_v19 = vrot.slane %v675_v60, 1  ;;  %v1027_v45 = vrot.slane %v902_v33, 2  ;;  %v2449_v55 = vrot.slane %v2340_v13, 7 }
 0x169   : > { %v1028_v43 = vrot.slane %v903_v12, 2  ;;  %v1267_v59 = vmul.f32 %v4809_v51, %v4751_v49  ;;  %v1696_v39 = vadd.f32 %v1582_v54, %v1419_v37  ;;  %v5396_v10 = vrot.slane %v4591_v48, 1 }
 0x16a   : > { %v2341_v6 = vadd.f32 %v4937_v8, %v2286_v24  ;;  %v1127_v63 = vadd.f32 %v1027_v45, %v4610_v15  ;;  %v4989_v30 = vmul.f32 %v4809_v51, %v4753_v23  ;;  %v1494_v48 = vmul.f32 %v4820_v53, %v4751_v49 }
 0x16b   : > { %v755_v5 = vsel %vm710_vm0, %v5396_v10, %v754_v19  ;;  %v1029_v44 = vsel %vm956_vm1, %v1027_v45, %v1028_v43  ;;  %v1345_v56 = vrot.slane %v1267_v59, 1  ;;  %v1797_v61 = vadd.f32 %v1749_v58, %v1696_v39 }
 0x16c   : > { %v2450_v50 = vrot.slane %v2341_v6, 7  ;;  %v850_v20 = vadd.f32 %v755_v5, %v588_v26  ;;  %v1228_v60 = vadd.f32 %v4795_v14, %v1127_v63  ;;  %v1346_v54 = vrot.slane %v4989_v30, 1 }
 0x16d   : > { %v1495_v24 = vmul.f32 %v4820_v53, %v4753_v23  ;;  %v1772_v26 = vmul.f32 %v4828_v1, %v4964_v25  ;;  %v2010_v58 = vadd.f32 %v1913_v42, %v1797_v61  ;;  %v1618_v37 = vrot.slane %v1494_v48, 2 }
 0x16e   : > { %v2451_v33 = vsel %vm2418_vm2, %v2449_v55, %v2450_v50  ;;  %v1128_v15 = vadd.f32 %v1029_v44, %v850_v20  ;;  %v1347_v13 = vsel %vm710_vm0, %v1345_v56, %v1346_v54  ;;  %v1441_v12 = vadd.f32 %v1345_v56, %v1228_v60 }
 0x16f   : > { %3118 = vmatprep.mubr.f32.mxu0 %v2451_v33  ;;  %v1619_v6 = vrot.slane %v1495_v24, 2  ;;  %v1858_v55 = vmul.f32 %v4838_v21, %v4964_v25  ;;  %v5008_v59 = vmul.f32 %v4838_v21, %v4966_v52  ;;  %v2287_v39 = vadd.f32 %v2173_v0, %v2010_v58  ;;  %v535_v0 = vld [vmem:[#allocation2 + $0x20] sm:$0x1] }
 0x170   : > { %v1229_v45 = vadd.f32 %v1181_v35, %v1128_v15  ;;  %v1718_v10 = vadd.f32 %v1618_v37, %v1441_v12  ;;  %v2085_v5 = vmul.f32 %v4847_v27, %v4964_v25  ;;  %v2086_v34 = vmul.f32 %v4847_v27, %v4966_v52 }
 0x171   : > { %v1620_v63 = vsel %vm956_vm1, %v1618_v37, %v1619_v6  ;;  %v1936_v35 = vrot.slane %v1858_v55, 1  ;;  %v1937_v30 = vrot.slane %v5008_v59, 1  ;;  %v2342_v20 = vadd.f32 %v4937_v8, %v2287_v39 }
 0x172   : > { %v1442_v42 = vadd.f32 %v1347_v13, %v1229_v45  ;;  %v1819_v44 = vadd.f32 %v4832_v47, %v1718_v10  ;;  %v2209_v56 = vrot.slane %v2085_v5, 2  ;;  %v2210_v61 = vrot.slane %v2086_v34, 2 }
 0x173   : > { %v1938_v48 = vsel %vm710_vm0, %v1936_v35, %v1937_v30  ;;  %v589_v33 = vmul.f32 %v4756_v16, %v4581_v4  ;;  %v5397_v15 = vrot.slane %v4641_v17, 2  ;;  %v2452_v58 = vrot.slane %v2342_v20, 7 }
 0x174   : > { %v1719_v60 = vadd.f32 %v1620_v63, %v1442_v42  ;;  %v2032_v13 = vadd.f32 %v1936_v35, %v1819_v44  ;;  %v2211_v12 = vsel %vm956_vm1, %v2209_v56, %v2210_v61  ;;  %v1182_v37 = vmul.f32 %v4787_v29, %v4753_v23 }
 0x175   : > { %v1031_v24 = vsel %vm956_vm1, %v1028_v43, %v5397_v15  ;;  %v851_v55 = vadd.f32 %v754_v19, %v589_v33  ;;  %v5030_v39 = vmul.f32 %v4820_v53, %v535_v0  ;;  %v1622_v4 = vsel %vm956_vm1, %v1619_v6, %v1621_v11 }
 0x176   : > { %v1820_v45 = vadd.f32 %v1772_v26, %v1719_v60  ;;  %v2453_v17 = vsel %vm2418_vm2, %v2450_v50, %v2452_v58  ;;  %v2309_v10 = vadd.f32 %v2209_v56, %v2032_v13  ;;  %v1773_v43 = vmul.f32 %v4828_v1, %v4966_v52 }
 0x177   : > { %v2087_v5 = vmul.f32 %v4847_v27, %v535_v0  ;;  %3119 = vmatmul.mubr.f32.gmra.mxu0 %v2453_v17  ;;  %v1129_v42 = vadd.f32 %v1031_v24, %v851_v55  ;;  %v1626_v19 = vrot.slane %v5030_v39, 2  ;;  %v567_v26 = vmul.f32 %v4756_v16, %v4664_v40 }
 0x178   : > { %v2033_v34 = vadd.f32 %v1938_v48, %v1820_v45  ;;  %v2364_v41 = vadd.f32 %v4937_v8, %v2309_v10  ;;  %v661_v11 = vmul.f32 %v4762_v36, %v4666_v9  ;;  %v881_v50 = vmul.f32 %v4776_v18, %v4664_v40 }
 0x179   : > { %v2212_v63 = vrot.slane %v2087_v5, 2  ;;  %v1230_v35 = vadd.f32 %v1182_v37, %v1129_v42  ;;  %v882_v20 = vmul.f32 %v4776_v18, %v4666_v9  ;;  %v1160_v44 = vmul.f32 %v4915_v62, %v4787_v29 }
 0x17a   : > { %v2310_v6 = vadd.f32 %v2211_v12, %v2033_v34  ;;  %v2489_v56 = vrot.slane %v2364_v41, 7  ;;  %v733_v60 = vrot.slane %v661_v11, 1  ;;  %v992_v48 = vrot.slane %v881_v50, 2  ;;  %v3277_v11 = vld [vmem:[#allocation2 + $0xe0] sm:$0xff] }
 0x17b   : > { %v2213_v0 = vsel %vm956_vm1, %v2210_v61, %v2212_v63  ;;  %v1443_v15 = vadd.f32 %v1346_v54, %v1230_v35  ;;  %v993_v24 = vrot.slane %v882_v20, 2  ;;  %v1253_v40 = vmul.f32 %v4915_v62, %v4809_v51 }
 0x17c   : > { %v2365_v33 = vadd.f32 %v4937_v8, %v2310_v6  ;;  %v5398_v58 = vrot.slane %v4675_v57, 1  ;;  %v1106_v12 = vadd.f32 %v992_v48, %v4692_v7  ;;  %v5061_v37 = vmul.f32 %v4922_v38, %v4809_v51 }
 0x17d   : > { %v1473_v61 = vmul.f32 %v4915_v62, %v4820_v53  ;;  %v1720_v55 = vadd.f32 %v1622_v4, %v1443_v15  ;;  %v994_v17 = vsel %vm956_vm1, %v992_v48, %v993_v24  ;;  %v1324_v5 = vrot.slane %v1253_v40, 1  ;;  %v3278_v48 = vld [vmem:[#allocation2 + $0x1e0] sm:$0xff] }
 0x17e   : > { %v734_v13 = vsel %vm710_vm0, %v5398_v58, %v733_v60  ;;  %v2490_v45 = vrot.slane %v2365_v33, 7  ;;  %v1207_v10 = vadd.f32 %v4795_v14, %v1106_v12  ;;  %v1325_v57 = vrot.slane %v5061_v37, 1 }
 0x17f   : > { %v829_v54 = vadd.f32 %v734_v13, %v567_v26  ;;  %v1474_v7 = vmul.f32 %v4922_v38, %v4820_v53  ;;  %v1821_v42 = vadd.f32 %v1773_v43, %v1720_v55  ;;  %v1583_v63 = vrot.slane %v1473_v61, 2 }
 0x180   : > { %v2491_v34 = vsel %vm2418_vm2, %v2489_v56, %v2490_v45  ;;  %v1326_v62 = vsel %vm710_vm0, %v1324_v5, %v1325_v57  ;;  %v1420_v4 = vadd.f32 %v1324_v5, %v1207_v10  ;;  %v1751_v50 = vmul.f32 %v3277_v11, %v4828_v1 }
 0x181   : > { %v1107_v41 = vadd.f32 %v994_v17, %v829_v54  ;;  %3142 = vmatprep.mubr.f32.mxu1 %v2491_v34  ;;  %v1584_v26 = vrot.slane %v1474_v7, 2  ;;  %v2034_v6 = vadd.f32 %v1937_v30, %v1821_v42  ;;  %v1844_v20 = vmul.f32 %v3277_v11, %v4838_v21 }
 0x182   : > { %v5077_v56 = vmul.f32 %v3278_v48, %v4838_v21  ;;  %v1697_v33 = vadd.f32 %v1583_v63, %v1420_v4  ;;  %v2064_v15 = vmul.f32 %v3277_v11, %v4847_v27  ;;  %v2065_v40 = vmul.f32 %v3278_v48, %v4847_v27 }
 0x183   : > { %v1208_v35 = vadd.f32 %v1160_v44, %v1107_v41  ;;  %v1585_v43 = vsel %vm956_vm1, %v1583_v63, %v1584_v26  ;;  %v2311_v58 = vadd.f32 %v2213_v0, %v2034_v6  ;;  %v1915_v12 = vrot.slane %v1844_v20, 1  ;;  %v3279_v6 = vld [vmem:[#allocation2 + $0x1f0] sm:$0x1] }
 0x184   : > { %v1916_v59 = vrot.slane %v5077_v56, 1  ;;  %v1798_v30 = vadd.f32 %v4832_v47, %v1697_v33  ;;  %v2174_v44 = vrot.slane %v2064_v15, 2  ;;  %v2175_v37 = vrot.slane %v2065_v40, 2 }
 0x185   : > { %v1421_v13 = vadd.f32 %v1326_v62, %v1208_v35  ;;  %v568_v61 = vmul.f32 %v4756_v16, %v4666_v9  ;;  %v2366_v55 = vadd.f32 %v4937_v8, %v2311_v58  ;;  %v5399_v0 = vrot.slane %v4729_v22, 2 }
 0x186   : > { %v1917_v17 = vsel %vm710_vm0, %v1915_v12, %v1916_v59  ;;  %v2011_v5 = vadd.f32 %v1915_v12, %v1798_v30  ;;  %v2176_v7 = vsel %vm956_vm1, %v2174_v44, %v2175_v37  ;;  %v1161_v42 = vmul.f32 %v4922_v38, %v4787_v29 }
 0x187   : > { %v1698_v54 = vadd.f32 %v1585_v43, %v1421_v13  ;;  %v996_v10 = vsel %vm956_vm1, %v993_v24, %v5399_v0  ;;  %v830_v34 = vadd.f32 %v733_v60, %v568_v61  ;;  %v2492_v41 = vrot.slane %v2366_v55, 7 }
 0x188   : > { %v1475_v63 = vmul.f32 %v4960_v28, %v4820_v53  ;;  %v1752_v62 = vmul.f32 %v3278_v48, %v4828_v1  ;;  %v2288_v4 = vadd.f32 %v2174_v44, %v2011_v5  ;;  %v2066_v22 = vmul.f32 %v3279_v6, %v4847_v27 }
 0x189   : > { %v1799_v9 = vadd.f32 %v1751_v50, %v1698_v54  ;;  %v1108_v11 = vadd.f32 %v996_v10, %v830_v34  ;;  %v591_v24 = vmul.f32 %v4756_v16, %v4751_v49  ;;  %v2493_v60 = vsel %vm2418_vm2, %v2490_v45, %v2492_v41  ;;  %v5105_v50 = vpop.f32.mrf.mxu0 }
 0x18a   : > { %v1586_v20 = vrot.slane %v1475_v63, 2  ;;  %v677_v38 = vmul.f32 %v4762_v36, %v4753_v23  ;;  %3143 = vmatmul.mubr.f32.gmra.mxu1 %v2493_v60  ;;  %v2343_v1 = vadd.f32 %v4937_v8, %v2288_v4  ;;  %v2177_v48 = vrot.slane %v2066_v22, 2  ;;  %v3126_v4 = vpop.f32.mrf.mxu1 }
 0x18b   : > { %v2012_v35 = vadd.f32 %v1917_v17, %v1799_v9  ;;  %v1209_v28 = vadd.f32 %v1161_v42, %v1108_v11  ;;  %v905_v43 = vmul.f32 %v4776_v18, %v4751_v49  ;;  %v906_v45 = vmul.f32 %v4776_v18, %v4753_v23  ;;  %v2613_v55 = vpop.f32.mrf.mxu0 }
 0x18c   : > { %v1587_v15 = vsel %vm956_vm1, %v1584_v26, %v1586_v20  ;;  %v757_v40 = vrot.slane %v677_v38, 1  ;;  %v2454_v58 = vrot.slane %v2343_v1, 7  ;;  %v2178_v36 = vsel %vm956_vm1, %v2175_v37, %v2177_v48  ;;  %v539_v1 = vld [vmem:[#allocation2 + $0xa0] sm:$0x1]  ;;  %v2693_v48 = vpop.f32.mrf.mxu1 }
 0x18d   : > { %v2289_v33 = vadd.f32 %v2176_v7, %v2012_v35  ;;  %v1422_v13 = vadd.f32 %v1325_v57, %v1209_v28  ;;  %v1032_v12 = vrot.slane %v905_v43, 2  ;;  %v5400_v44 = vrot.slane %v4770_v31, 1  ;;  %v3105_v11 = vpop.f32.mrf.mxu0 }
 0x18e   : > { %v1033_v49 = vrot.slane %v906_v45, 2  ;;  %v1184_v26 = vmul.f32 %v4787_v29, %v4964_v25  ;;  %v1269_v57 = vmul.f32 %v4809_v51, %v4964_v25  ;;  %v1270_v31 = vmul.f32 %v4809_v51, %v4966_v52  ;;  %v3129_v39 = vpop.f32.mrf.mxu1 }
 0x18f   : > { %v5115_v30 = vadd.f32 %v4937_v8, %v2289_v33  ;;  %v758_v61 = vsel %vm710_vm0, %v5400_v44, %v757_v40  ;;  %v1699_v54 = vadd.f32 %v1587_v15, %v1422_v13  ;;  %v1130_v18 = vadd.f32 %v1032_v12, %v4804_v46  ;;  %v2623_v43 = vpop.f32.mrf.mxu0 }
 0x190   : > { %v853_v17 = vadd.f32 %v758_v61, %v591_v24  ;;  %v1034_v0 = vsel %vm956_vm1, %v1032_v12, %v1033_v49  ;;  %v1497_v10 = vmul.f32 %v4820_v53, %v4964_v25  ;;  %v1348_v42 = vrot.slane %v1269_v57, 1 }
 0x191   : > { %v2455_v37 = vrot.slane %v5115_v30, 7  ;;  %v1800_v5 = vadd.f32 %v1752_v62, %v1699_v54  ;;  %v1231_v34 = vadd.f32 %v4795_v14, %v1130_v18  ;;  %v1349_v41 = vrot.slane %v1270_v31, 1 }
 0x192   : > { %v1131_v7 = vadd.f32 %v1034_v0, %v853_v17  ;;  %v1498_v9 = vmul.f32 %v4820_v53, %v4966_v52  ;;  %v1623_v63 = vrot.slane %v1497_v10, 2  ;;  %v1860_v62 = vmul.f32 %v4838_v21, %v4791_v3 }
 0x193   : > { %v2456_v46 = vsel %vm2418_vm2, %v2454_v58, %v2455_v37  ;;  %v2013_v51 = vadd.f32 %v1916_v59, %v1800_v5  ;;  %v1444_v25 = vadd.f32 %v1348_v42, %v1231_v34  ;;  %v1350_v14 = vsel %vm710_vm0, %v1348_v42, %v1349_v41 }
 0x194   : > { %3121 = vmatprep.mubr.f32.mxu0 %v2456_v46  ;;  %v1232_v6 = vadd.f32 %v1184_v26, %v1131_v7  ;;  %v1624_v22 = vrot.slane %v1498_v9, 2  ;;  %v2088_v24 = vmul.f32 %v4847_v27, %v4791_v3  ;;  %v592_v53 = vmul.f32 %v4756_v16, %v4753_v23  ;;  %v5153_v16 = vld [vmem:[%s5330_s4] ss:$0 sm:$0xff]  ;;  %v2703_v7 = vpop.f32.mrf.mxu1 }
 0x195   : > { %v2290_v60 = vadd.f32 %v2178_v36, %v2013_v51  ;;  %v1721_v20 = vadd.f32 %v1623_v63, %v1444_v25  ;;  %v1939_v38 = vrot.slane %v1860_v62, 1  ;;  %v1036_v21 = vsel %vm956_vm1, %v1033_v49, %v1035_v32  ;;  %v5165_v36 = vld [vmem:[%s5331_s5] ss:$0 sm:$0xff] }
 0x196   : > { %v1445_v35 = vadd.f32 %v1350_v14, %v1232_v6  ;;  %v1625_v56 = vsel %vm956_vm1, %v1623_v63, %v1624_v22  ;;  %v2214_v59 = vrot.slane %v2088_v24, 2  ;;  %v854_v28 = vadd.f32 %v757_v40, %v592_v53 }
 0x197   : > { %v2345_v3 = vadd.f32 %v4937_v8, %v2290_v60  ;;  %v1822_v23 = vadd.f32 %v4832_v47, %v1721_v20  ;;  %v1185_v40 = vmul.f32 %v4787_v29, %v4966_v52  ;;  %v1627_v2 = vsel %vm956_vm1, %v1624_v22, %v1626_v19  ;;  %v3108_v19 = vpop.f32.mrf.mxu0 }
 0x198   : > { %v1722_v33 = vadd.f32 %v1625_v56, %v1445_v35  ;;  %v1132_v15 = vadd.f32 %v1036_v21, %v854_v28  ;;  %v2090_v13 = vmul.f32 %v4847_v27, %v539_v1  ;;  %v2780_v30 = vmul.f32 %v5105_v50, %v5153_v16 }
 0x199   : > { %v2457_v32 = vrot.slane %v2345_v3, 7  ;;  %v2035_v58 = vadd.f32 %v1939_v38, %v1822_v23  ;;  %v2779_v29 = vmul.f32 %v5153_v16, %v2613_v55  ;;  %v2796_v52 = vmul.f32 %v3126_v4, %v5153_v16  ;;  %v2633_v34 = vpop.f32.mrf.mxu0 }
 0x19a   : > { %v1823_v45 = vadd.f32 %v4832_v47, %v1722_v33  ;;  %v1233_v12 = vadd.f32 %v1185_v40, %v1132_v15  ;;  %v2217_v49 = vrot.slane %v2090_v13, 2  ;;  %v2819_v54 = vadd.f32 %v5165_v36, %v2780_v30 }
 0x19b   : > { %v2458_v44 = vsel %vm2418_vm2, %v2455_v37, %v2457_v32  ;;  %v2312_v27 = vadd.f32 %v2214_v59, %v2035_v58  ;;  %v2818_v17 = vadd.f32 %v5165_v36, %v2779_v29  ;;  %v2835_v50 = vadd.f32 %v5165_v36, %v2796_v52 }
 0x19c   : > { %v2036_v61 = vadd.f32 %v1939_v38, %v1823_v45  ;;  %3122 = vmatmul.mubr.f32.gmra.mxu0 %v2458_v44  ;;  %v1446_v26 = vadd.f32 %v1349_v41, %v1233_v12  ;;  %v2218_v57 = vsel %vm956_vm1, %v2214_v59, %v2217_v49  ;;  %v2782_v0 = vmul.f32 %v3105_v11, %v5153_v16 }
 0x19d   : > { %v2367_v55 = vadd.f32 %v4937_v8, %v2312_v27  ;;  %2851 = vst [vmem:[%s5180_s11 + $0x8] sm:$0xff] %v2819_v54  ;;  %2850 = vst [vmem:[%s5180_s11] sm:$0xff] %v2818_v17  ;;  %v2795_v37 = vmul.f32 %v5153_v16, %v2693_v48  ;;  %v2781_v10 = vmul.f32 %v5153_v16, %v2623_v43 }
 0x19e   : > { %v2313_v18 = vadd.f32 %v2214_v59, %v2036_v61  ;;  %v1723_v31 = vadd.f32 %v1627_v2, %v1446_v26  ;;  %2867 = vst [vmem:[%s5180_s11 + $0x88] sm:$0xff] %v2835_v50  ;;  %v2798_v5 = vmul.f32 %v3129_v39, %v5153_v16  ;;  %v2821_v41 = vadd.f32 %v5165_v36, %v2782_v0 }
 0x19f   : > { %v2494_v46 = vrot.slane %v2367_v55, 7  ;;  %v2784_v9 = vmul.f32 %v3108_v19, %v5153_v16  ;;  %v2834_v4 = vadd.f32 %v5165_v36, %v2795_v37  ;;  %v2820_v11 = vadd.f32 %v5165_v36, %v2781_v10 }
 0x1a0   : > { %v2368_v42 = vadd.f32 %v4937_v8, %v2313_v18  ;;  %v1824_v63 = vadd.f32 %v4832_v47, %v1723_v31  ;;  %v2837_v51 = vadd.f32 %v5165_v36, %v2798_v5  ;;  %2853 = vst [vmem:[%s5180_s11 + $0x18] sm:$0xff] %v2821_v41  ;;  %v2797_v62 = vmul.f32 %v5153_v16, %v2703_v7 }
 0x1a1   : > { %v2823_v25 = vadd.f32 %v5165_v36, %v2784_v9  ;;  %v2783_v14 = vmul.f32 %v5153_v16, %v2633_v34  ;;  %2866 = vst [vmem:[%s5180_s11 + $0x80] sm:$0xff] %v2834_v4  ;;  %2852 = vst [vmem:[%s5180_s11 + $0x10] sm:$0xff] %v2820_v11 }
 0x1a2   : > { %v2495_v6 = vrot.slane %v2368_v42, 7  ;;  %v2037_v22 = vadd.f32 %v1939_v38, %v1824_v63  ;;  %2869 = vst [vmem:[%s5180_s11 + $0x98] sm:$0xff] %v2837_v51  ;;  %v2836_v24 = vadd.f32 %v5165_v36, %v2797_v62 }
 0x1a3   : > { %2855 = vst [vmem:[%s5180_s11 + $0x28] sm:$0xff] %v2823_v25  ;;  %v2822_v53 = vadd.f32 %v5165_v36, %v2783_v14 }
 0x1a4   : > { %v2496_v47 = vsel %vm2418_vm2, %v2494_v46, %v2495_v6  ;;  %v2314_v60 = vadd.f32 %v2218_v57, %v2037_v22  ;;  %2868 = vst [vmem:[%s5180_s11 + $0x90] sm:$0xff] %v2836_v24 }
 0x1a5   : > { %3145 = vmatprep.mubr.f32.mxu1 %v2496_v47  ;;  %2854 = vst [vmem:[%s5180_s11 + $0x20] sm:$0xff] %v2822_v53 }
 0x1a6   : > { %v2369_v35 = vadd.f32 %v4937_v8, %v2314_v60 }
 0x1a8   : > { %v2497_v20 = vrot.slane %v2369_v35, 7 }
 0x1aa   : > { %v2498_v38 = vsel %vm2418_vm2, %v2495_v6, %v2497_v20 }
 0x1ab   : > { %3146 = vmatmul.mubr.f32.gmra.mxu1 %v2498_v38 }
 0x1ad   : > { %v3132_v56 = vpop.f32.mrf.mxu1 }
 0x1ae   : > { %v2800_v59 = vmul.f32 %v3132_v56, %v5153_v16 }
 0x1af   : > { %v2713_v1 = vpop.f32.mrf.mxu1 }
 0x1b0   : > { %v2839_v28 = vadd.f32 %v5165_v36, %v2800_v59  ;;  %v2799_v21 = vmul.f32 %v5153_v16, %v2713_v1 }
 0x1b2   : > { %2871 = vst [vmem:[%s5180_s11 + $0xa8] sm:$0xff] %v2839_v28  ;;  %v2838_v48 = vadd.f32 %v5165_v36, %v2799_v21 }
 0x1b4   : > { %2870 = vst [vmem:[%s5180_s11 + $0xa0] sm:$0xff] %v2838_v48 }
 0x1bf   : > { %v3111_v8 = vpop.f32.mrf.mxu0 }
 0x1c0   : > { %v2786_v43 = vmul.f32 %v3111_v8, %v5153_v16 }
 0x1c1   : > { %v2643_v3 = vpop.f32.mrf.mxu0 }
 0x1c2   : > { %v2825_v33 = vadd.f32 %v5165_v36, %v2786_v43  ;;  %v2785_v23 = vmul.f32 %v5153_v16, %v2643_v3 }
 0x1c4   : > { %2857 = vst [vmem:[%s5180_s11 + $0x38] sm:$0xff] %v2825_v33  ;;  %v2824_v15 = vadd.f32 %v5165_v36, %v2785_v23 }
 0x1c6   : > { %2856 = vst [vmem:[%s5180_s11 + $0x30] sm:$0xff] %v2824_v15 }
 0x1d3   : > { %v3135_v40 = vpop.f32.mrf.mxu1 }
 0x1d4   : > { %v2802_v2 = vmul.f32 %v3135_v40, %v5153_v16 }
 0x1d5   : > { %v2723_v32 = vpop.f32.mrf.mxu1 }
 0x1d6   : > { %v2841_v45 = vadd.f32 %v5165_v36, %v2802_v2  ;;  %v2801_v58 = vmul.f32 %v5153_v16, %v2723_v32 }
 0x1d8   : > { %2873 = vst [vmem:[%s5180_s11 + $0xb8] sm:$0xff] %v2841_v45  ;;  %v2840_v13 = vadd.f32 %v5165_v36, %v2801_v58 }
 0x1da   : > { %2872 = vst [vmem:[%s5180_s11 + $0xb0] sm:$0xff] %v2840_v13 }
 0x1e7   : > { %v3114_v12 = vpop.f32.mrf.mxu0 }
 0x1e8   : > { %v2788_v30 = vmul.f32 %v3114_v12, %v5153_v16 }
 0x1e9   : > { %v2653_v29 = vpop.f32.mrf.mxu0 }
 0x1ea   : > { %v2827_v52 = vadd.f32 %v5165_v36, %v2788_v30  ;;  %v2787_v39 = vmul.f32 %v5153_v16, %v2653_v29 }
 0x1ec   : > { %2859 = vst [vmem:[%s5180_s11 + $0x48] sm:$0xff] %v2827_v52  ;;  %v2826_v19 = vadd.f32 %v5165_v36, %v2787_v39 }
 0x1ee   : > { %2858 = vst [vmem:[%s5180_s11 + $0x40] sm:$0xff] %v2826_v19 }
 0x1fb   : > { %v3138_v44 = vpop.f32.mrf.mxu1 }
 0x1fc   : > { %v2804_v61 = vmul.f32 %v3138_v44, %v5153_v16 }
 0x1fd   : > { %v2733_v27 = vpop.f32.mrf.mxu1 }
 0x1fe   : > { %v2843_v49 = vadd.f32 %v5165_v36, %v2804_v61  ;;  %v2803_v26 = vmul.f32 %v5153_v16, %v2733_v27 }
 0x200   : > { %2875 = vst [vmem:[%s5180_s11 + $0xc8] sm:$0xff] %v2843_v49  ;;  %v2842_v54 = vadd.f32 %v5165_v36, %v2803_v26 }
 0x202   : > { %2874 = vst [vmem:[%s5180_s11 + $0xc0] sm:$0xff] %v2842_v54 }
 0x20f   : > { %v3117_v17 = vpop.f32.mrf.mxu0 }
 0x210   : > { %v2790_v50 = vmul.f32 %v3117_v17, %v5153_v16 }
 0x211   : > { %v2663_v18 = vpop.f32.mrf.mxu0 }
 0x212   : > { %v2829_v55 = vadd.f32 %v5165_v36, %v2790_v50  ;;  %v2789_v57 = vmul.f32 %v5153_v16, %v2663_v18 }
 0x214   : > { %2861 = vst [vmem:[%s5180_s11 + $0x58] sm:$0xff] %v2829_v55  ;;  %v2828_v0 = vadd.f32 %v5165_v36, %v2789_v57 }
 0x216   : > { %2860 = vst [vmem:[%s5180_s11 + $0x50] sm:$0xff] %v2828_v0 }
 0x225   : > { %v3141_v31 = vpop.f32.mrf.mxu1 }
 0x226   : > { %v2806_v37 = vmul.f32 %v3141_v31, %v5153_v16 }
 0x227   : > { %v2743_v10 = vpop.f32.mrf.mxu1 }
 0x228   : > { %v2845_v5 = vadd.f32 %v5165_v36, %v2806_v37  ;;  %v2805_v7 = vmul.f32 %v5153_v16, %v2743_v10 }
 0x22a   : > { %2877 = vst [vmem:[%s5180_s11 + $0xd8] sm:$0xff] %v2845_v5  ;;  %v2844_v34 = vadd.f32 %v5165_v36, %v2805_v7 }
 0x22c   : > { %2876 = vst [vmem:[%s5180_s11 + $0xd0] sm:$0xff] %v2844_v34 }
 0x237   : > { %v3120_v42 = vpop.f32.mrf.mxu0 }
 0x238   : > { %v2792_v46 = vmul.f32 %v3120_v42, %v5153_v16 }
 0x239   : > { %v2673_v41 = vpop.f32.mrf.mxu0 }
 0x23a   : > { %v2831_v9 = vadd.f32 %v5165_v36, %v2792_v46  ;;  %v2791_v63 = vmul.f32 %v5153_v16, %v2673_v41 }
 0x23c   : > { %2863 = vst [vmem:[%s5180_s11 + $0x68] sm:$0xff] %v2831_v9  ;;  %v2830_v4 = vadd.f32 %v5165_v36, %v2791_v63 }
 0x23e   : > { %2862 = vst [vmem:[%s5180_s11 + $0x60] sm:$0xff] %v2830_v4 }
 0x24a   : > { %v3144_v11 = vpop.f32.mrf.mxu1 }
 0x24b   : > { %v2808_v51 = vmul.f32 %v3144_v11, %v5153_v16 }
 0x24c   : > { %v2753_v6 = vpop.f32.mrf.mxu1 }
 0x24d   : > { %v2847_v25 = vadd.f32 %v5165_v36, %v2808_v51  ;;  %v2807_v62 = vmul.f32 %v5153_v16, %v2753_v6 }
 0x24f   : > { %2879 = vst [vmem:[%s5180_s11 + $0xe8] sm:$0xff] %v2847_v25  ;;  %v2846_v14 = vadd.f32 %v5165_v36, %v2807_v62 }
 0x251   : > { %2878 = vst [vmem:[%s5180_s11 + $0xe0] sm:$0xff] %v2846_v14 }
 0x25c   : > { %v3123_v22 = vpop.f32.mrf.mxu0 }
 0x25d   : > { %v2794_v47 = vmul.f32 %v3123_v22, %v5153_v16 }
 0x25e   : > { %v2683_v24 = vpop.f32.mrf.mxu0 }
 0x25f   : > { %v2833_v53 = vadd.f32 %v5165_v36, %v2794_v47  ;;  %v2793_v60 = vmul.f32 %v5153_v16, %v2683_v24 }
 0x261   : > { %2865 = vst [vmem:[%s5180_s11 + $0x78] sm:$0xff] %v2833_v53  ;;  %v2832_v35 = vadd.f32 %v5165_v36, %v2793_v60 }
 0x263   : > { %2864 = vst [vmem:[%s5180_s11 + $0x70] sm:$0xff] %v2832_v35 }
 0x26b   : > { %v3147_v20 = vpop.f32.mrf.mxu1 }
 0x26c   : > { %v2810_v38 = vmul.f32 %v3147_v20, %v5153_v16 }
 0x26d   : > { %v2763_v56 = vpop.f32.mrf.mxu1 }
 0x26e   : > { %v2849_v59 = vadd.f32 %v5165_v36, %v2810_v38  ;;  %v2809_v1 = vmul.f32 %v5153_v16, %v2763_v56 }
 0x270   : > { %2881 = vst [vmem:[%s5180_s11 + $0xf8] sm:$0xff] %v2849_v59  ;;  %v2848_v28 = vadd.f32 %v5165_v36, %v2809_v1 }
 0x272   : > { %2880 = vst [vmem:[%s5180_s11 + $0xf0] sm:$0xff] %v2848_v28 }
 0x273   : > { %3373 = shalt.err (!%p3370_p3)
}
 0x274   : > { %s3374_s16 = scalar_lea.hbm %s5278_s29, 4096  ;;  %s3378_s26 = scalar_lea.hbm %s5332_s6, 8192 }
 0x275   : > { %p3375_p11 = scmp.ne.s32.totalorder %s5278_s29, %s3374_s16  ;;  %p3379_p4 = scmp.lt.s32.totalorder %s5278_s29, %s5332_s6 }
 0x276   : > { %p3380_p6 = scmp.lt.s32.totalorder %s3378_s26, %s3374_s16 }
 0x277   : > { %p3376_p9 = pnand %p3375_p11, %p5401_p2 }
 0x278   : > { %p3381_p8 = por %p3380_p6, %p3379_p4 }
 0x279   : > { %p3377_p1 = pneg %p3376_p9 }
 0x27b   : > { %p3382_p5 = pnand %p3381_p8, %p3377_p1 }
 0x27d   : > { %3385 = shalt.err (!%p3382_p5)
}
 0x27e   : > { %s3437_s18 = smov 128   ;;  %s3438_s27 = smov 8  }
 0x27f   : > { %3190 = dma.vmem_to_hbm [thread:$0]  (%p5401_p2), %s5280_s9, 4096, %s5278_s29, %s2883_s25, %s3437_s18, %s3437_s18, %s3438_s27  }
 0x280 PF: > { %s2911_s15 = sand.u32 1, %s3416_s21   ;;  %p5402_p7 = scmp.ne.s32.totalorder %s5354_s28, 0 }
 0x281   : > { %p5403_p12 = scmp.ge.s32.totalorder %s3428_s24, 2  ;;  %s2912_s17 = scalar_lea.sflag [#allocation5], %s2911_s15 }
 0x283   : > { %p3204_p13 = pnand %p5403_p12, %p5402_p7 }
 0x285   : > { %p3205_p0 = pneg %p3204_p13 }
 0x287   : > { %3411 = dma.done.wait (%p3205_p0), %s2912_s17, 4096  }
 0x288   : > { %3413 = vsyncadd (%p3205_p0), %s2912_s17, 4294963200  ;;  %p20_p10 = scmp.ge.s32.totalorder %s3552_s19, 4   ;;  %s5404_s21 = smov %s3420_s22 }
 0x289   : > { %s5405_s22 = smov %s3424_s23  ;;  %s5406_s23 = smov %s3568_s7 }
 0x28a   : > { %s5407_s24 = smov %s3552_s19  ;;  %22 = sbr.rel (!%p20_p10) target bundleno = 6 (0x6), region = 98 }
 0x28f   :  { %2917 = vsyncpa [#allocation4], 1 }
 0x290   :  { %2919 = vsyncpa [#allocation4 + $0x1], 1 }
 0x291   :  { %2920 = vsyncpa [#allocation7], 1 }
 0x292   :  { %2921 = vsyncpa [#allocation5], 1 }
 0x293   :  { %2923 = vsyncpa [#allocation5 + $0x1], 1 }

</bundles_post_ra>
